<compile_context>
chip_gen: v6e
topology: v6e:2x2x1
jax: 0.10.0
libtpu: 0.0.40
codegen_flags: <defaults>
</compile_context>

<pallas_src>
import functools
import math

import jax
import jax.numpy as jnp
from jax.experimental import pallas as pl

# ----------------------------- config (small synthetic BERT) -----------------------------
VOCAB = 100
HIDDEN = 32
NUM_HEADS = 2
HEAD_DIM = HIDDEN // NUM_HEADS
INTERMEDIATE = 64
NUM_LAYERS = 2
MAX_POS = 16
NUM_CLASSES = 4
HEAD_HIDDEN = 16  # width of the first classification-head linear

# head layers, same spec format the PyTorch module's get_layer() consumes
LAYER_INFOS = [
    {"name": "linear", "in": HIDDEN, "out": HEAD_HIDDEN},
    {"name": "relu"},
    {"name": "dropout", "p": 0.1},
    {"name": "linear", "in": HEAD_HIDDEN, "out": NUM_CLASSES},
    {"name": "softmax"},
]

# ------------------------- packed-slab layout (static offsets) ----------------------------
# Weight slab: every matrix starts at column 0; row offsets are multiples of 16 so bf16
# sublane packing stays tile-aligned.
W_COLS = 3 * HIDDEN                                   # 96 (fused QKV is the widest)
_WL_STRIDE = 3 * HIDDEN + INTERMEDIATE                # 160 rows per encoder layer
W_QKV_OFF = 0                                         # [HIDDEN, 3*HIDDEN]
W_O_OFF = HIDDEN                                      # [HIDDEN, HIDDEN]
W_FF1_OFF = 2 * HIDDEN                                # [HIDDEN, INTERMEDIATE]
W_FF2_OFF = 3 * HIDDEN                                # [INTERMEDIATE, HIDDEN]
W_POOL_OFF = NUM_LAYERS * _WL_STRIDE                  # [HIDDEN, HIDDEN]
W_H1_OFF = W_POOL_OFF + HIDDEN                        # [HIDDEN, HEAD_HIDDEN]
W_H2_OFF = W_H1_OFF + HIDDEN                          # [HEAD_HIDDEN, NUM_CLASSES]
W_ROWS = W_H2_OFF + HEAD_HIDDEN                       # 400

# Bias / LayerNorm slab: one row per vector parameter.
B_COLS = 3 * HIDDEN                                   # 96
B_EMB_G, B_EMB_B = 0, 1
B_L_BASE = 2
_BL_STRIDE = 8
B_QKV, B_O, B_LN1G, B_LN1B, B_FF1, B_FF2, B_LN2G, B_LN2B = range(8)
B_POOL = B_L_BASE + NUM_LAYERS * _BL_STRIDE           # 18
B_H1 = B_POOL + 1                                     # 19
B_H2 = B_H1 + 1                                       # 20
B_ROWS = 24                                           # padded to a multiple of 8


# ----------------------------------- fused Pallas kernel ---------------------------------
def _bert_fused_kernel(h0_ref, mask_ref, w_ref, b_ref, out_ref, *, B, S, H, Dh, L):
    D = H * Dh
    N = B * S
    I = INTERMEDIATE
    scale = 1.0 / math.sqrt(Dh)
    f32 = jnp.float32
    bf16 = jnp.bfloat16
    inv_d = 1.0 / D

    def layernorm(x, g_row, b_row):
        # single pass: sum and sum-of-squares are independent reductions
        mu = jnp.sum(x, axis=-1, keepdims=True) * inv_d
        ex2 = jnp.sum(x * x, axis=-1, keepdims=True) * inv_d
        var = jnp.maximum(ex2 - mu * mu, 0.0)
        return (x - mu) * jax.lax.rsqrt(var + 1e-12) * g_row + b_row

    def brow(r, n):
        return b_ref[r:r + 1, 0:n]                      # [1, n] f32, broadcasts over rows

    mask = mask_ref[...]                                # [N, N] block-diag + key-padding

    # embedding layernorm
    h = layernorm(h0_ref[...], brow(B_EMB_G, D), brow(B_EMB_B, D))        # [N, D] f32

    for l in range(L):                                  # static unroll (L=2)
        wbase = l * _WL_STRIDE
        bbase = B_L_BASE + l * _BL_STRIDE

        # ---- fused QKV projection: one [D, 3D] matmul (bf16 operands, f32 acc) --------
        wqkv = w_ref[wbase + W_QKV_OFF: wbase + W_QKV_OFF + D, 0:3 * D]
        qkv = jnp.dot(h.astype(bf16), wqkv,
                      preferred_element_type=f32) + brow(bbase + B_QKV, 3 * D)
        q = qkv[:, 0:D]
        k = qkv[:, D:2 * D]
        v = qkv[:, 2 * D:3 * D]

        # ---- attention: one [N, N] matmul per head; batches separated by the mask -----
        ctx_heads = []
        for hh in range(H):
            cs = slice(hh * Dh, (hh + 1) * Dh)
            qh = (q[:, cs] * scale).astype(bf16)
            kh = k[:, cs].astype(bf16)
            vh = v[:, cs].astype(bf16)
            s = jnp.einsum("qd,kd->qk", qh, kh, preferred_element_type=f32)   # [N, N]
            s = s + mask
            s = s - jnp.max(s, axis=-1, keepdims=True)
            p = jnp.exp(s)
            p = p / jnp.sum(p, axis=-1, keepdims=True)                        # exact
            ctx_heads.append(jnp.dot(p.astype(bf16), vh, preferred_element_type=f32))
        ctx = jnp.concatenate(ctx_heads, axis=-1)                             # [N, D]

        # ---- output projection + (residual add fused into) layernorm ------------------
        wo = w_ref[wbase + W_O_OFF: wbase + W_O_OFF + D, 0:D]
        attn_out = jnp.dot(ctx.astype(bf16), wo,
                           preferred_element_type=f32) + brow(bbase + B_O, D)
        h = layernorm(h + attn_out, brow(bbase + B_LN1G, D), brow(bbase + B_LN1B, D))

        # ---- FFN + GELU + (residual fused into) layernorm ------------------------------
        w1 = w_ref[wbase + W_FF1_OFF: wbase + W_FF1_OFF + D, 0:I]
        w2 = w_ref[wbase + W_FF2_OFF: wbase + W_FF2_OFF + I, 0:D]
        ffn = jnp.dot(h.astype(bf16), w1,
                      preferred_element_type=f32) + brow(bbase + B_FF1, I)
        # TODO(synk): HF BERT default gelu is erf-based; tanh approximation used here.
        ffn = 0.5 * ffn * (1.0 + jnp.tanh(
            0.7978845608028654 * (ffn + 0.044715 * ffn * ffn * ffn)))
        ffn_out = jnp.dot(ffn.astype(bf16), w2,
                          preferred_element_type=f32) + brow(bbase + B_FF2, D)
        h = layernorm(h + ffn_out, brow(bbase + B_LN2G, D), brow(bbase + B_LN2B, D))

    # ---- CLS rows only -> pooler -> classification head (linear/relu/linear/softmax) --
    cls = jnp.concatenate([h[b * S:b * S + 1, :] for b in range(B)], axis=0)   # [B, D]
    wp = w_ref[W_POOL_OFF:W_POOL_OFF + D, 0:D]
    pooled = jnp.tanh(jnp.dot(cls.astype(bf16), wp,
                              preferred_element_type=f32) + brow(B_POOL, D))
    wh1 = w_ref[W_H1_OFF:W_H1_OFF + D, 0:HEAD_HIDDEN]
    z = jnp.dot(pooled.astype(bf16), wh1,
                preferred_element_type=f32) + brow(B_H1, HEAD_HIDDEN)
    z = jnp.maximum(z, 0.0)                                                     # relu
    # dropout: identity in eval-mode forward semantics
    wh2 = w_ref[W_H2_OFF:W_H2_OFF + HEAD_HIDDEN, 0:NUM_CLASSES]
    z = jnp.dot(z.astype(bf16), wh2,
                preferred_element_type=f32) + brow(B_H2, NUM_CLASSES)
    z = z - jnp.max(z, axis=-1, keepdims=True)                                  # softmax(dim=1)
    e = jnp.exp(z)
    out_ref[...] = e / jnp.sum(e, axis=-1, keepdims=True)                       # one dense store


# ---------------------------------- parameter init ---------------------------------------
def init_params(key):
    keys = iter(jax.random.split(key, 256))

    def nrm(shape):
        return (0.02 * jax.random.normal(next(keys), shape)).astype(jnp.float32)

    def zeros(shape):
        return jnp.zeros(shape, jnp.float32)

    def ones(shape):
        return jnp.ones(shape, jnp.float32)

    params = {
        "word_emb": nrm((VOCAB, HIDDEN)),
        "pos_emb": nrm((MAX_POS, HIDDEN)),
        "type_emb": nrm((2, HIDDEN)),
        "emb_ln_g": ones((HIDDEN,)),
        "emb_ln_b": zeros((HIDDEN,)),
        "layers": [],
        "wp": nrm((HIDDEN, HIDDEN)),
        "bp": zeros((HIDDEN,)),
        "head": [],
    }
    for _ in range(NUM_LAYERS):
        params["layers"].append({
            "wq": nrm((HIDDEN, HIDDEN)), "bq": zeros((HIDDEN,)),
            "wk": nrm((HIDDEN, HIDDEN)), "bk": zeros((HIDDEN,)),
            "wv": nrm((HIDDEN, HIDDEN)), "bv": zeros((HIDDEN,)),
            "wo": nrm((HIDDEN, HIDDEN)), "bo": zeros((HIDDEN,)),
            "ln1_g": ones((HIDDEN,)), "ln1_b": zeros((HIDDEN,)),
            "w1": nrm((HIDDEN, INTERMEDIATE)), "b1": zeros((INTERMEDIATE,)),
            "w2": nrm((INTERMEDIATE, HIDDEN)), "b2": zeros((HIDDEN,)),
            "ln2_g": ones((HIDDEN,)), "ln2_b": zeros((HIDDEN,)),
        })
    for info in LAYER_INFOS:
        if info["name"] == "linear":
            params["head"].append({"w": nrm((info["in"], info["out"])),
                                   "b": zeros((info["out"],))})
        else:
            params["head"].append(None)
    return params


# ----------------------- one-time parameter packing (hoisted out of forward) --------------
def pack_params(params):
    head_ps = [p for p in params["head"] if p is not None]

    w = jnp.zeros((W_ROWS, W_COLS), jnp.float32)
    for l, lp in enumerate(params["layers"]):
        base = l * _WL_STRIDE
        wqkv = jnp.concatenate([lp["wq"], lp["wk"], lp["wv"]], axis=1)
        w = w.at[base + W_QKV_OFF:base + W_QKV_OFF + HIDDEN, 0:3 * HIDDEN].set(wqkv)
        w = w.at[base + W_O_OFF:base + W_O_OFF + HIDDEN, 0:HIDDEN].set(lp["wo"])
        w = w.at[base + W_FF1_OFF:base + W_FF1_OFF + HIDDEN, 0:INTERMEDIATE].set(lp["w1"])
        w = w.at[base + W_FF2_OFF:base + W_FF2_OFF + INTERMEDIATE, 0:HIDDEN].set(lp["w2"])
    w = w.at[W_POOL_OFF:W_POOL_OFF + HIDDEN, 0:HIDDEN].set(params["wp"])
    w = w.at[W_H1_OFF:W_H1_OFF + HIDDEN, 0:HEAD_HIDDEN].set(head_ps[0]["w"])
    w = w.at[W_H2_OFF:W_H2_OFF + HEAD_HIDDEN, 0:NUM_CLASSES].set(head_ps[1]["w"])

    b = jnp.zeros((B_ROWS, B_COLS), jnp.float32)
    b = b.at[B_EMB_G, 0:HIDDEN].set(params["emb_ln_g"])
    b = b.at[B_EMB_B, 0:HIDDEN].set(params["emb_ln_b"])
    for l, lp in enumerate(params["layers"]):
        base = B_L_BASE + l * _BL_STRIDE
        b = b.at[base + B_QKV, 0:3 * HIDDEN].set(
            jnp.concatenate([lp["bq"], lp["bk"], lp["bv"]]))
        b = b.at[base + B_O, 0:HIDDEN].set(lp["bo"])
        b = b.at[base + B_LN1G, 0:HIDDEN].set(lp["ln1_g"])
        b = b.at[base + B_LN1B, 0:HIDDEN].set(lp["ln1_b"])
        b = b.at[base + B_FF1, 0:INTERMEDIATE].set(lp["b1"])
        b = b.at[base + B_FF2, 0:HIDDEN].set(lp["b2"])
        b = b.at[base + B_LN2G, 0:HIDDEN].set(lp["ln2_g"])
        b = b.at[base + B_LN2B, 0:HIDDEN].set(lp["ln2_b"])
    b = b.at[B_POOL, 0:HIDDEN].set(params["bp"])
    b = b.at[B_H1, 0:HEAD_HIDDEN].set(head_ps[0]["b"])
    b = b.at[B_H2, 0:NUM_CLASSES].set(head_ps[1]["b"])

    return {
        "word_emb": params["word_emb"],
        "pos_emb": params["pos_emb"],
        "type_emb": params["type_emb"],
        "w_slab": w.astype(jnp.bfloat16),   # MXU operands: bf16 (halves DMA bytes too)
        "b_slab": b,                        # biases / LN params stay f32 (VPU math in f32)
    }


# ------------------------------------- forward -------------------------------------------
def bert_model_forward(packed, input_ids, attention_mask):
    B, S = input_ids.shape
    D = HIDDEN
    N = B * S

    # fused head kernel is specialized to the LAYER_INFOS pattern below
    assert [i["name"] for i in LAYER_INFOS] == ["linear", "relu", "dropout",
                                                "linear", "softmax"]

    # embeddings (gather is glue; everything else is in the fused kernel)
    # TODO(synk): token_type_ids hard-coded to type 0 for all positions.
    h0 = (packed["word_emb"][input_ids]
          + packed["pos_emb"][:S][None, :, :]
          + packed["type_emb"][0][None, None, :]).reshape(N, D).astype(jnp.float32)

    # additive attention mask in final [B*S, B*S] form: block-diagonal (no cross-batch
    # attention) AND key-padding; 0 where allowed, -1e9 otherwise.
    valid = attention_mask.astype(jnp.float32)                              # [B, S]
    same_batch = jnp.kron(jnp.eye(B, dtype=jnp.float32),
                          jnp.ones((S, S), jnp.float32))                    # [N, N]
    allowed = same_batch * valid.reshape(N)[None, :]
    add_mask = (1.0 - allowed) * -1e9                                        # [N, N]

    inputs = [h0, add_mask, packed["w_slab"], packed["b_slab"]]

    def full_spec(x):
        idx = (0,) * x.ndim
        return pl.BlockSpec(x.shape, lambda idx=idx: idx)

    kernel = functools.partial(_bert_fused_kernel,
                               B=B, S=S, H=NUM_HEADS, Dh=HEAD_DIM, L=NUM_LAYERS)

    out = pl.pallas_call(
        kernel,
        out_shape=jax.ShapeDtypeStruct((B, NUM_CLASSES), jnp.float32),
        in_specs=[full_spec(x) for x in inputs],
        out_specs=pl.BlockSpec((B, NUM_CLASSES), lambda: (0, 0)),
    )(*inputs)
    return out


# --------------------------------------- main ---------------------------------------------
if __name__ == "__main__":
    B, S = 2, 8
    key = jax.random.PRNGKey(0)
    k_ids, k_params = jax.random.split(key)

    input_ids = jax.random.randint(k_ids, (B, S), 0, VOCAB, dtype=jnp.int32)
    attention_mask = jnp.ones((B, S), dtype=jnp.int32).at[1, 6:].set(0)

    params = init_params(k_params)
    packed = pack_params(params)   # one-time packing, hoisted out of the forward path

    out = bert_model_forward(packed, input_ids, attention_mask)
    out = jax.block_until_ready(out)

    assert out.shape == (B, NUM_CLASSES), out.shape
    assert bool(jnp.all(jnp.isfinite(out)))
    # softmax head: rows should sum to ~1
    assert bool(jnp.allclose(jnp.sum(out, axis=1), 1.0, atol=1e-5))
    print("KERNEL_OK")
</pallas_src>

<mosaic_0001>
module attributes {stable_mosaic.version = 11 : i64} {
  func.func @_bert_fused_kernel(%arg0: memref<16x32xf32, #tpu.memory_space<vmem>>, %arg1: memref<16x16xf32, #tpu.memory_space<vmem>>, %arg2: memref<400x96xbf16, #tpu.memory_space<vmem>>, %arg3: memref<24x96xf32, #tpu.memory_space<vmem>>, %arg4: memref<2x4xf32, #tpu.memory_space<vmem>>) attributes {dimension_semantics = [], scalar_prefetch = 0 : i64, scratch_operands = 0 : i64, tpu.core_type = #tpu.core_type<tc>} {
    %c0 = arith.constant 0 : index
    %c0_0 = arith.constant 0 : index
    %0 = vector.load %arg1[%c0, %c0_0] : memref<16x16xf32, #tpu.memory_space<vmem>>, vector<16x16xf32>
    %c0_1 = arith.constant 0 : index
    %c0_2 = arith.constant 0 : index
    %1 = vector.load %arg0[%c0_1, %c0_2] : memref<16x32xf32, #tpu.memory_space<vmem>>, vector<16x32xf32>
    %c0_3 = arith.constant 0 : index
    %c0_4 = arith.constant 0 : index
    %2 = vector.load %arg3[%c0_3, %c0_4] : memref<24x96xf32, #tpu.memory_space<vmem>>, vector<1x32xf32>
    %c1 = arith.constant 1 : index
    %c0_5 = arith.constant 0 : index
    %3 = vector.load %arg3[%c1, %c0_5] : memref<24x96xf32, #tpu.memory_space<vmem>>, vector<1x32xf32>
    %cst = arith.constant dense<0.000000e+00> : vector<16xf32>
    %4 = vector.multi_reduction <add>, %1, %cst [1] : vector<16x32xf32> to vector<16xf32>
    %5 = vector.shape_cast %4 : vector<16xf32> to vector<16x1xf32>
    %cst_6 = arith.constant 3.125000e-02 : f32
    %6 = vector.broadcast %cst_6 : f32 to vector<16x1xf32>
    %7 = arith.mulf %5, %6 : vector<16x1xf32>
    %8 = arith.mulf %1, %1 : vector<16x32xf32>
    %cst_7 = arith.constant dense<0.000000e+00> : vector<16xf32>
    %9 = vector.multi_reduction <add>, %8, %cst_7 [1] : vector<16x32xf32> to vector<16xf32>
    %10 = vector.shape_cast %9 : vector<16xf32> to vector<16x1xf32>
    %cst_8 = arith.constant 3.125000e-02 : f32
    %11 = vector.broadcast %cst_8 : f32 to vector<16x1xf32>
    %12 = arith.mulf %10, %11 : vector<16x1xf32>
    %13 = arith.mulf %7, %7 : vector<16x1xf32>
    %14 = arith.subf %12, %13 : vector<16x1xf32>
    %cst_9 = arith.constant 0.000000e+00 : f32
    %15 = vector.broadcast %cst_9 : f32 to vector<16x1xf32>
    %16 = arith.maximumf %14, %15 : vector<16x1xf32>
    %17 = vector.broadcast %7 : vector<16x1xf32> to vector<16x32xf32>
    %18 = arith.subf %1, %17 : vector<16x32xf32>
    %cst_10 = arith.constant 9.99999996E-13 : f32
    %19 = vector.broadcast %cst_10 : f32 to vector<16x1xf32>
    %20 = arith.addf %16, %19 : vector<16x1xf32>
    %21 = math.rsqrt %20 : vector<16x1xf32>
    %22 = vector.broadcast %21 : vector<16x1xf32> to vector<16x32xf32>
    %23 = arith.mulf %18, %22 : vector<16x32xf32>
    %24 = vector.broadcast %2 : vector<1x32xf32> to vector<16x32xf32>
    %25 = arith.mulf %23, %24 : vector<16x32xf32>
    %26 = vector.broadcast %3 : vector<1x32xf32> to vector<16x32xf32>
    %27 = arith.addf %25, %26 : vector<16x32xf32>
    %c0_11 = arith.constant 0 : index
    %c0_12 = arith.constant 0 : index
    %28 = vector.load %arg2[%c0_11, %c0_12] : memref<400x96xbf16, #tpu.memory_space<vmem>>, vector<32x96xbf16>
    %29 = arith.truncf %27 : vector<16x32xf32> to vector<16x32xbf16>
    %cst_13 = arith.constant dense<0.000000e+00> : vector<16x96xf32>
    %30 = tpu.matmul %29, %28, %cst_13 {dimension_numbers = #tpu.dot_dimension_numbers<[1], [0], [0], [1], [0, 0, 1, 1], [], []>} : vector<16x32xbf16>, vector<32x96xbf16>, vector<16x96xf32> -> vector<16x96xf32>
    %c2 = arith.constant 2 : index
    %c0_14 = arith.constant 0 : index
    %31 = vector.load %arg3[%c2, %c0_14] : memref<24x96xf32, #tpu.memory_space<vmem>>, vector<1x96xf32>
    %32 = vector.broadcast %31 : vector<1x96xf32> to vector<16x96xf32>
    %33 = arith.addf %30, %32 : vector<16x96xf32>
    %34 = vector.extract_strided_slice %33 {offsets = [0, 0], sizes = [16, 32], strides = [1, 1]} : vector<16x96xf32> to vector<16x32xf32>
    %35 = vector.extract_strided_slice %33 {offsets = [0, 32], sizes = [16, 32], strides = [1, 1]} : vector<16x96xf32> to vector<16x32xf32>
    %36 = vector.extract_strided_slice %33 {offsets = [0, 64], sizes = [16, 32], strides = [1, 1]} : vector<16x96xf32> to vector<16x32xf32>
    %37 = vector.extract_strided_slice %34 {offsets = [0, 0], sizes = [16, 16], strides = [1, 1]} : vector<16x32xf32> to vector<16x16xf32>
    %cst_15 = arith.constant 2.500000e-01 : f32
    %38 = vector.broadcast %cst_15 : f32 to vector<16x16xf32>
    %39 = arith.mulf %37, %38 : vector<16x16xf32>
    %40 = arith.truncf %39 : vector<16x16xf32> to vector<16x16xbf16>
    %41 = vector.extract_strided_slice %35 {offsets = [0, 0], sizes = [16, 16], strides = [1, 1]} : vector<16x32xf32> to vector<16x16xf32>
    %42 = arith.truncf %41 : vector<16x16xf32> to vector<16x16xbf16>
    %43 = vector.extract_strided_slice %36 {offsets = [0, 0], sizes = [16, 16], strides = [1, 1]} : vector<16x32xf32> to vector<16x16xf32>
    %44 = arith.truncf %43 : vector<16x16xf32> to vector<16x16xbf16>
    "tpu.trace_start"() <{level = 10 : i32, message = "qd,kd->qk"}> : () -> ()
    %cst_16 = arith.constant dense<0.000000e+00> : vector<16x16xf32>
    %45 = tpu.matmul %40, %42, %cst_16 {dimension_numbers = #tpu.dot_dimension_numbers<[1], [1], [0], [0], [0, 0, 1, 0], [], []>} : vector<16x16xbf16>, vector<16x16xbf16>, vector<16x16xf32> -> vector<16x16xf32>
    "tpu.trace_stop"() : () -> ()
    %46 = arith.addf %45, %0 : vector<16x16xf32>
    %cst_17 = arith.constant dense<0xFF800000> : vector<16xf32>
    %47 = vector.multi_reduction <maximumf>, %46, %cst_17 [1] : vector<16x16xf32> to vector<16xf32>
    %48 = vector.shape_cast %47 : vector<16xf32> to vector<16x1xf32>
    %49 = vector.broadcast %48 : vector<16x1xf32> to vector<16x16xf32>
    %50 = arith.subf %46, %49 : vector<16x16xf32>
    %51 = math.exp %50 : vector<16x16xf32>
    %cst_18 = arith.constant dense<0.000000e+00> : vector<16xf32>
    %52 = vector.multi_reduction <add>, %51, %cst_18 [1] : vector<16x16xf32> to vector<16xf32>
    %53 = vector.shape_cast %52 : vector<16xf32> to vector<16x1xf32>
    %54 = vector.broadcast %53 : vector<16x1xf32> to vector<16x16xf32>
    %55 = arith.divf %51, %54 : vector<16x16xf32>
    %56 = arith.truncf %55 : vector<16x16xf32> to vector<16x16xbf16>
    %cst_19 = arith.constant dense<0.000000e+00> : vector<16x16xf32>
    %57 = tpu.matmul %56, %44, %cst_19 {dimension_numbers = #tpu.dot_dimension_numbers<[1], [0], [0], [1], [0, 0, 1, 1], [], []>} : vector<16x16xbf16>, vector<16x16xbf16>, vector<16x16xf32> -> vector<16x16xf32>
    %58 = vector.extract_strided_slice %34 {offsets = [0, 16], sizes = [16, 16], strides = [1, 1]} : vector<16x32xf32> to vector<16x16xf32>
    %cst_20 = arith.constant 2.500000e-01 : f32
    %59 = vector.broadcast %cst_20 : f32 to vector<16x16xf32>
    %60 = arith.mulf %58, %59 : vector<16x16xf32>
    %61 = arith.truncf %60 : vector<16x16xf32> to vector<16x16xbf16>
    %62 = vector.extract_strided_slice %35 {offsets = [0, 16], sizes = [16, 16], strides = [1, 1]} : vector<16x32xf32> to vector<16x16xf32>
    %63 = arith.truncf %62 : vector<16x16xf32> to vector<16x16xbf16>
    %64 = vector.extract_strided_slice %36 {offsets = [0, 16], sizes = [16, 16], strides = [1, 1]} : vector<16x32xf32> to vector<16x16xf32>
    %65 = arith.truncf %64 : vector<16x16xf32> to vector<16x16xbf16>
    "tpu.trace_start"() <{level = 10 : i32, message = "qd,kd->qk"}> : () -> ()
    %cst_21 = arith.constant dense<0.000000e+00> : vector<16x16xf32>
    %66 = tpu.matmul %61, %63, %cst_21 {dimension_numbers = #tpu.dot_dimension_numbers<[1], [1], [0], [0], [0, 0, 1, 0], [], []>} : vector<16x16xbf16>, vector<16x16xbf16>, vector<16x16xf32> -> vector<16x16xf32>
    "tpu.trace_stop"() : () -> ()
    %67 = arith.addf %66, %0 : vector<16x16xf32>
    %cst_22 = arith.constant dense<0xFF800000> : vector<16xf32>
    %68 = vector.multi_reduction <maximumf>, %67, %cst_22 [1] : vector<16x16xf32> to vector<16xf32>
    %69 = vector.shape_cast %68 : vector<16xf32> to vector<16x1xf32>
    %70 = vector.broadcast %69 : vector<16x1xf32> to vector<16x16xf32>
    %71 = arith.subf %67, %70 : vector<16x16xf32>
    %72 = math.exp %71 : vector<16x16xf32>
    %cst_23 = arith.constant dense<0.000000e+00> : vector<16xf32>
    %73 = vector.multi_reduction <add>, %72, %cst_23 [1] : vector<16x16xf32> to vector<16xf32>
    %74 = vector.shape_cast %73 : vector<16xf32> to vector<16x1xf32>
    %75 = vector.broadcast %74 : vector<16x1xf32> to vector<16x16xf32>
    %76 = arith.divf %72, %75 : vector<16x16xf32>
    %77 = arith.truncf %76 : vector<16x16xf32> to vector<16x16xbf16>
    %cst_24 = arith.constant dense<0.000000e+00> : vector<16x16xf32>
    %78 = tpu.matmul %77, %65, %cst_24 {dimension_numbers = #tpu.dot_dimension_numbers<[1], [0], [0], [1], [0, 0, 1, 1], [], []>} : vector<16x16xbf16>, vector<16x16xbf16>, vector<16x16xf32> -> vector<16x16xf32>
    %79 = tpu.concatenate %57, %78 in 1 : vector<16x16xf32>, vector<16x16xf32> -> vector<16x32xf32>
    %c32 = arith.constant 32 : index
    %c0_25 = arith.constant 0 : index
    %80 = vector.load %arg2[%c32, %c0_25] : memref<400x96xbf16, #tpu.memory_space<vmem>>, vector<32x32xbf16>
    %81 = arith.truncf %79 : vector<16x32xf32> to vector<16x32xbf16>
    %cst_26 = arith.constant dense<0.000000e+00> : vector<16x32xf32>
    %82 = tpu.matmul %81, %80, %cst_26 {dimension_numbers = #tpu.dot_dimension_numbers<[1], [0], [0], [1], [0, 0, 1, 1], [], []>} : vector<16x32xbf16>, vector<32x32xbf16>, vector<16x32xf32> -> vector<16x32xf32>
    %c3 = arith.constant 3 : index
    %c0_27 = arith.constant 0 : index
    %83 = vector.load %arg3[%c3, %c0_27] : memref<24x96xf32, #tpu.memory_space<vmem>>, vector<1x32xf32>
    %84 = vector.broadcast %83 : vector<1x32xf32> to vector<16x32xf32>
    %85 = arith.addf %82, %84 : vector<16x32xf32>
    %86 = arith.addf %27, %85 : vector<16x32xf32>
    %c4 = arith.constant 4 : index
    %c0_28 = arith.constant 0 : index
    %87 = vector.load %arg3[%c4, %c0_28] : memref<24x96xf32, #tpu.memory_space<vmem>>, vector<1x32xf32>
    %c5 = arith.constant 5 : index
    %c0_29 = arith.constant 0 : index
    %88 = vector.load %arg3[%c5, %c0_29] : memref<24x96xf32, #tpu.memory_space<vmem>>, vector<1x32xf32>
    %cst_30 = arith.constant dense<0.000000e+00> : vector<16xf32>
    %89 = vector.multi_reduction <add>, %86, %cst_30 [1] : vector<16x32xf32> to vector<16xf32>
    %90 = vector.shape_cast %89 : vector<16xf32> to vector<16x1xf32>
    %cst_31 = arith.constant 3.125000e-02 : f32
    %91 = vector.broadcast %cst_31 : f32 to vector<16x1xf32>
    %92 = arith.mulf %90, %91 : vector<16x1xf32>
    %93 = arith.mulf %86, %86 : vector<16x32xf32>
    %cst_32 = arith.constant dense<0.000000e+00> : vector<16xf32>
    %94 = vector.multi_reduction <add>, %93, %cst_32 [1] : vector<16x32xf32> to vector<16xf32>
    %95 = vector.shape_cast %94 : vector<16xf32> to vector<16x1xf32>
    %cst_33 = arith.constant 3.125000e-02 : f32
    %96 = vector.broadcast %cst_33 : f32 to vector<16x1xf32>
    %97 = arith.mulf %95, %96 : vector<16x1xf32>
    %98 = arith.mulf %92, %92 : vector<16x1xf32>
    %99 = arith.subf %97, %98 : vector<16x1xf32>
    %cst_34 = arith.constant 0.000000e+00 : f32
    %100 = vector.broadcast %cst_34 : f32 to vector<16x1xf32>
    %101 = arith.maximumf %99, %100 : vector<16x1xf32>
    %102 = vector.broadcast %92 : vector<16x1xf32> to vector<16x32xf32>
    %103 = arith.subf %86, %102 : vector<16x32xf32>
    %cst_35 = arith.constant 9.99999996E-13 : f32
    %104 = vector.broadcast %cst_35 : f32 to vector<16x1xf32>
    %105 = arith.addf %101, %104 : vector<16x1xf32>
    %106 = math.rsqrt %105 : vector<16x1xf32>
    %107 = vector.broadcast %106 : vector<16x1xf32> to vector<16x32xf32>
    %108 = arith.mulf %103, %107 : vector<16x32xf32>
    %109 = vector.broadcast %87 : vector<1x32xf32> to vector<16x32xf32>
    %110 = arith.mulf %108, %109 : vector<16x32xf32>
    %111 = vector.broadcast %88 : vector<1x32xf32> to vector<16x32xf32>
    %112 = arith.addf %110, %111 : vector<16x32xf32>
    %c64 = arith.constant 64 : index
    %c0_36 = arith.constant 0 : index
    %113 = vector.load %arg2[%c64, %c0_36] : memref<400x96xbf16, #tpu.memory_space<vmem>>, vector<32x64xbf16>
    %c96 = arith.constant 96 : index
    %c0_37 = arith.constant 0 : index
    %114 = vector.load %arg2[%c96, %c0_37] : memref<400x96xbf16, #tpu.memory_space<vmem>>, vector<64x32xbf16>
    %115 = arith.truncf %112 : vector<16x32xf32> to vector<16x32xbf16>
    %cst_38 = arith.constant dense<0.000000e+00> : vector<16x64xf32>
    %116 = tpu.matmul %115, %113, %cst_38 {dimension_numbers = #tpu.dot_dimension_numbers<[1], [0], [0], [1], [0, 0, 1, 1], [], []>} : vector<16x32xbf16>, vector<32x64xbf16>, vector<16x64xf32> -> vector<16x64xf32>
    %c6 = arith.constant 6 : index
    %c0_39 = arith.constant 0 : index
    %117 = vector.load %arg3[%c6, %c0_39] : memref<24x96xf32, #tpu.memory_space<vmem>>, vector<1x64xf32>
    %118 = vector.broadcast %117 : vector<1x64xf32> to vector<16x64xf32>
    %119 = arith.addf %116, %118 : vector<16x64xf32>
    %cst_40 = arith.constant 5.000000e-01 : f32
    %120 = vector.broadcast %cst_40 : f32 to vector<16x64xf32>
    %121 = arith.mulf %120, %119 : vector<16x64xf32>
    %cst_41 = arith.constant 4.471500e-02 : f32
    %122 = vector.broadcast %cst_41 : f32 to vector<16x64xf32>
    %123 = arith.mulf %122, %119 : vector<16x64xf32>
    %124 = arith.mulf %123, %119 : vector<16x64xf32>
    %125 = arith.mulf %124, %119 : vector<16x64xf32>
    %126 = arith.addf %119, %125 : vector<16x64xf32>
    %cst_42 = arith.constant 0.797884583 : f32
    %127 = vector.broadcast %cst_42 : f32 to vector<16x64xf32>
    %128 = arith.mulf %127, %126 : vector<16x64xf32>
    %129 = math.tanh %128 : vector<16x64xf32>
    %cst_43 = arith.constant 1.000000e+00 : f32
    %130 = vector.broadcast %cst_43 : f32 to vector<16x64xf32>
    %131 = arith.addf %130, %129 : vector<16x64xf32>
    %132 = arith.mulf %121, %131 : vector<16x64xf32>
    %133 = arith.truncf %132 : vector<16x64xf32> to vector<16x64xbf16>
    %cst_44 = arith.constant dense<0.000000e+00> : vector<16x32xf32>
    %134 = tpu.matmul %133, %114, %cst_44 {dimension_numbers = #tpu.dot_dimension_numbers<[1], [0], [0], [1], [0, 0, 1, 1], [], []>} : vector<16x64xbf16>, vector<64x32xbf16>, vector<16x32xf32> -> vector<16x32xf32>
    %c7 = arith.constant 7 : index
    %c0_45 = arith.constant 0 : index
    %135 = vector.load %arg3[%c7, %c0_45] : memref<24x96xf32, #tpu.memory_space<vmem>>, vector<1x32xf32>
    %136 = vector.broadcast %135 : vector<1x32xf32> to vector<16x32xf32>
    %137 = arith.addf %134, %136 : vector<16x32xf32>
    %138 = arith.addf %112, %137 : vector<16x32xf32>
    %c8 = arith.constant 8 : index
    %c0_46 = arith.constant 0 : index
    %139 = vector.load %arg3[%c8, %c0_46] : memref<24x96xf32, #tpu.memory_space<vmem>>, vector<1x32xf32>
    %c9 = arith.constant 9 : index
    %c0_47 = arith.constant 0 : index
    %140 = vector.load %arg3[%c9, %c0_47] : memref<24x96xf32, #tpu.memory_space<vmem>>, vector<1x32xf32>
    %cst_48 = arith.constant dense<0.000000e+00> : vector<16xf32>
    %141 = vector.multi_reduction <add>, %138, %cst_48 [1] : vector<16x32xf32> to vector<16xf32>
    %142 = vector.shape_cast %141 : vector<16xf32> to vector<16x1xf32>
    %cst_49 = arith.constant 3.125000e-02 : f32
    %143 = vector.broadcast %cst_49 : f32 to vector<16x1xf32>
    %144 = arith.mulf %142, %143 : vector<16x1xf32>
    %145 = arith.mulf %138, %138 : vector<16x32xf32>
    %cst_50 = arith.constant dense<0.000000e+00> : vector<16xf32>
    %146 = vector.multi_reduction <add>, %145, %cst_50 [1] : vector<16x32xf32> to vector<16xf32>
    %147 = vector.shape_cast %146 : vector<16xf32> to vector<16x1xf32>
    %cst_51 = arith.constant 3.125000e-02 : f32
    %148 = vector.broadcast %cst_51 : f32 to vector<16x1xf32>
    %149 = arith.mulf %147, %148 : vector<16x1xf32>
    %150 = arith.mulf %144, %144 : vector<16x1xf32>
    %151 = arith.subf %149, %150 : vector<16x1xf32>
    %cst_52 = arith.constant 0.000000e+00 : f32
    %152 = vector.broadcast %cst_52 : f32 to vector<16x1xf32>
    %153 = arith.maximumf %151, %152 : vector<16x1xf32>
    %154 = vector.broadcast %144 : vector<16x1xf32> to vector<16x32xf32>
    %155 = arith.subf %138, %154 : vector<16x32xf32>
    %cst_53 = arith.constant 9.99999996E-13 : f32
    %156 = vector.broadcast %cst_53 : f32 to vector<16x1xf32>
    %157 = arith.addf %153, %156 : vector<16x1xf32>
    %158 = math.rsqrt %157 : vector<16x1xf32>
    %159 = vector.broadcast %158 : vector<16x1xf32> to vector<16x32xf32>
    %160 = arith.mulf %155, %159 : vector<16x32xf32>
    %161 = vector.broadcast %139 : vector<1x32xf32> to vector<16x32xf32>
    %162 = arith.mulf %160, %161 : vector<16x32xf32>
    %163 = vector.broadcast %140 : vector<1x32xf32> to vector<16x32xf32>
    %164 = arith.addf %162, %163 : vector<16x32xf32>
    %c160 = arith.constant 160 : index
    %c0_54 = arith.constant 0 : index
    %165 = vector.load %arg2[%c160, %c0_54] : memref<400x96xbf16, #tpu.memory_space<vmem>>, vector<32x96xbf16>
    %166 = arith.truncf %164 : vector<16x32xf32> to vector<16x32xbf16>
    %cst_55 = arith.constant dense<0.000000e+00> : vector<16x96xf32>
    %167 = tpu.matmul %166, %165, %cst_55 {dimension_numbers = #tpu.dot_dimension_numbers<[1], [0], [0], [1], [0, 0, 1, 1], [], []>} : vector<16x32xbf16>, vector<32x96xbf16>, vector<16x96xf32> -> vector<16x96xf32>
    %c10 = arith.constant 10 : index
    %c0_56 = arith.constant 0 : index
    %168 = vector.load %arg3[%c10, %c0_56] : memref<24x96xf32, #tpu.memory_space<vmem>>, vector<1x96xf32>
    %169 = vector.broadcast %168 : vector<1x96xf32> to vector<16x96xf32>
    %170 = arith.addf %167, %169 : vector<16x96xf32>
    %171 = vector.extract_strided_slice %170 {offsets = [0, 0], sizes = [16, 32], strides = [1, 1]} : vector<16x96xf32> to vector<16x32xf32>
    %172 = vector.extract_strided_slice %170 {offsets = [0, 32], sizes = [16, 32], strides = [1, 1]} : vector<16x96xf32> to vector<16x32xf32>
    %173 = vector.extract_strided_slice %170 {offsets = [0, 64], sizes = [16, 32], strides = [1, 1]} : vector<16x96xf32> to vector<16x32xf32>
    %174 = vector.extract_strided_slice %171 {offsets = [0, 0], sizes = [16, 16], strides = [1, 1]} : vector<16x32xf32> to vector<16x16xf32>
    %cst_57 = arith.constant 2.500000e-01 : f32
    %175 = vector.broadcast %cst_57 : f32 to vector<16x16xf32>
    %176 = arith.mulf %174, %175 : vector<16x16xf32>
    %177 = arith.truncf %176 : vector<16x16xf32> to vector<16x16xbf16>
    %178 = vector.extract_strided_slice %172 {offsets = [0, 0], sizes = [16, 16], strides = [1, 1]} : vector<16x32xf32> to vector<16x16xf32>
    %179 = arith.truncf %178 : vector<16x16xf32> to vector<16x16xbf16>
    %180 = vector.extract_strided_slice %173 {offsets = [0, 0], sizes = [16, 16], strides = [1, 1]} : vector<16x32xf32> to vector<16x16xf32>
    %181 = arith.truncf %180 : vector<16x16xf32> to vector<16x16xbf16>
    "tpu.trace_start"() <{level = 10 : i32, message = "qd,kd->qk"}> : () -> ()
    %cst_58 = arith.constant dense<0.000000e+00> : vector<16x16xf32>
    %182 = tpu.matmul %177, %179, %cst_58 {dimension_numbers = #tpu.dot_dimension_numbers<[1], [1], [0], [0], [0, 0, 1, 0], [], []>} : vector<16x16xbf16>, vector<16x16xbf16>, vector<16x16xf32> -> vector<16x16xf32>
    "tpu.trace_stop"() : () -> ()
    %183 = arith.addf %182, %0 : vector<16x16xf32>
    %cst_59 = arith.constant dense<0xFF800000> : vector<16xf32>
    %184 = vector.multi_reduction <maximumf>, %183, %cst_59 [1] : vector<16x16xf32> to vector<16xf32>
    %185 = vector.shape_cast %184 : vector<16xf32> to vector<16x1xf32>
    %186 = vector.broadcast %185 : vector<16x1xf32> to vector<16x16xf32>
    %187 = arith.subf %183, %186 : vector<16x16xf32>
    %188 = math.exp %187 : vector<16x16xf32>
    %cst_60 = arith.constant dense<0.000000e+00> : vector<16xf32>
    %189 = vector.multi_reduction <add>, %188, %cst_60 [1] : vector<16x16xf32> to vector<16xf32>
    %190 = vector.shape_cast %189 : vector<16xf32> to vector<16x1xf32>
    %191 = vector.broadcast %190 : vector<16x1xf32> to vector<16x16xf32>
    %192 = arith.divf %188, %191 : vector<16x16xf32>
    %193 = arith.truncf %192 : vector<16x16xf32> to vector<16x16xbf16>
    %cst_61 = arith.constant dense<0.000000e+00> : vector<16x16xf32>
    %194 = tpu.matmul %193, %181, %cst_61 {dimension_numbers = #tpu.dot_dimension_numbers<[1], [0], [0], [1], [0, 0, 1, 1], [], []>} : vector<16x16xbf16>, vector<16x16xbf16>, vector<16x16xf32> -> vector<16x16xf32>
    %195 = vector.extract_strided_slice %171 {offsets = [0, 16], sizes = [16, 16], strides = [1, 1]} : vector<16x32xf32> to vector<16x16xf32>
    %cst_62 = arith.constant 2.500000e-01 : f32
    %196 = vector.broadcast %cst_62 : f32 to vector<16x16xf32>
    %197 = arith.mulf %195, %196 : vector<16x16xf32>
    %198 = arith.truncf %197 : vector<16x16xf32> to vector<16x16xbf16>
    %199 = vector.extract_strided_slice %172 {offsets = [0, 16], sizes = [16, 16], strides = [1, 1]} : vector<16x32xf32> to vector<16x16xf32>
    %200 = arith.truncf %199 : vector<16x16xf32> to vector<16x16xbf16>
    %201 = vector.extract_strided_slice %173 {offsets = [0, 16], sizes = [16, 16], strides = [1, 1]} : vector<16x32xf32> to vector<16x16xf32>
    %202 = arith.truncf %201 : vector<16x16xf32> to vector<16x16xbf16>
    "tpu.trace_start"() <{level = 10 : i32, message = "qd,kd->qk"}> : () -> ()
    %cst_63 = arith.constant dense<0.000000e+00> : vector<16x16xf32>
    %203 = tpu.matmul %198, %200, %cst_63 {dimension_numbers = #tpu.dot_dimension_numbers<[1], [1], [0], [0], [0, 0, 1, 0], [], []>} : vector<16x16xbf16>, vector<16x16xbf16>, vector<16x16xf32> -> vector<16x16xf32>
    "tpu.trace_stop"() : () -> ()
    %204 = arith.addf %203, %0 : vector<16x16xf32>
    %cst_64 = arith.constant dense<0xFF800000> : vector<16xf32>
    %205 = vector.multi_reduction <maximumf>, %204, %cst_64 [1] : vector<16x16xf32> to vector<16xf32>
    %206 = vector.shape_cast %205 : vector<16xf32> to vector<16x1xf32>
    %207 = vector.broadcast %206 : vector<16x1xf32> to vector<16x16xf32>
    %208 = arith.subf %204, %207 : vector<16x16xf32>
    %209 = math.exp %208 : vector<16x16xf32>
    %cst_65 = arith.constant dense<0.000000e+00> : vector<16xf32>
    %210 = vector.multi_reduction <add>, %209, %cst_65 [1] : vector<16x16xf32> to vector<16xf32>
    %211 = vector.shape_cast %210 : vector<16xf32> to vector<16x1xf32>
    %212 = vector.broadcast %211 : vector<16x1xf32> to vector<16x16xf32>
    %213 = arith.divf %209, %212 : vector<16x16xf32>
    %214 = arith.truncf %213 : vector<16x16xf32> to vector<16x16xbf16>
    %cst_66 = arith.constant dense<0.000000e+00> : vector<16x16xf32>
    %215 = tpu.matmul %214, %202, %cst_66 {dimension_numbers = #tpu.dot_dimension_numbers<[1], [0], [0], [1], [0, 0, 1, 1], [], []>} : vector<16x16xbf16>, vector<16x16xbf16>, vector<16x16xf32> -> vector<16x16xf32>
    %216 = tpu.concatenate %194, %215 in 1 : vector<16x16xf32>, vector<16x16xf32> -> vector<16x32xf32>
    %c192 = arith.constant 192 : index
    %c0_67 = arith.constant 0 : index
    %217 = vector.load %arg2[%c192, %c0_67] : memref<400x96xbf16, #tpu.memory_space<vmem>>, vector<32x32xbf16>
    %218 = arith.truncf %216 : vector<16x32xf32> to vector<16x32xbf16>
    %cst_68 = arith.constant dense<0.000000e+00> : vector<16x32xf32>
    %219 = tpu.matmul %218, %217, %cst_68 {dimension_numbers = #tpu.dot_dimension_numbers<[1], [0], [0], [1], [0, 0, 1, 1], [], []>} : vector<16x32xbf16>, vector<32x32xbf16>, vector<16x32xf32> -> vector<16x32xf32>
    %c11 = arith.constant 11 : index
    %c0_69 = arith.constant 0 : index
    %220 = vector.load %arg3[%c11, %c0_69] : memref<24x96xf32, #tpu.memory_space<vmem>>, vector<1x32xf32>
    %221 = vector.broadcast %220 : vector<1x32xf32> to vector<16x32xf32>
    %222 = arith.addf %219, %221 : vector<16x32xf32>
    %223 = arith.addf %164, %222 : vector<16x32xf32>
    %c12 = arith.constant 12 : index
    %c0_70 = arith.constant 0 : index
    %224 = vector.load %arg3[%c12, %c0_70] : memref<24x96xf32, #tpu.memory_space<vmem>>, vector<1x32xf32>
    %c13 = arith.constant 13 : index
    %c0_71 = arith.constant 0 : index
    %225 = vector.load %arg3[%c13, %c0_71] : memref<24x96xf32, #tpu.memory_space<vmem>>, vector<1x32xf32>
    %cst_72 = arith.constant dense<0.000000e+00> : vector<16xf32>
    %226 = vector.multi_reduction <add>, %223, %cst_72 [1] : vector<16x32xf32> to vector<16xf32>
    %227 = vector.shape_cast %226 : vector<16xf32> to vector<16x1xf32>
    %cst_73 = arith.constant 3.125000e-02 : f32
    %228 = vector.broadcast %cst_73 : f32 to vector<16x1xf32>
    %229 = arith.mulf %227, %228 : vector<16x1xf32>
    %230 = arith.mulf %223, %223 : vector<16x32xf32>
    %cst_74 = arith.constant dense<0.000000e+00> : vector<16xf32>
    %231 = vector.multi_reduction <add>, %230, %cst_74 [1] : vector<16x32xf32> to vector<16xf32>
    %232 = vector.shape_cast %231 : vector<16xf32> to vector<16x1xf32>
    %cst_75 = arith.constant 3.125000e-02 : f32
    %233 = vector.broadcast %cst_75 : f32 to vector<16x1xf32>
    %234 = arith.mulf %232, %233 : vector<16x1xf32>
    %235 = arith.mulf %229, %229 : vector<16x1xf32>
    %236 = arith.subf %234, %235 : vector<16x1xf32>
    %cst_76 = arith.constant 0.000000e+00 : f32
    %237 = vector.broadcast %cst_76 : f32 to vector<16x1xf32>
    %238 = arith.maximumf %236, %237 : vector<16x1xf32>
    %239 = vector.broadcast %229 : vector<16x1xf32> to vector<16x32xf32>
    %240 = arith.subf %223, %239 : vector<16x32xf32>
    %cst_77 = arith.constant 9.99999996E-13 : f32
    %241 = vector.broadcast %cst_77 : f32 to vector<16x1xf32>
    %242 = arith.addf %238, %241 : vector<16x1xf32>
    %243 = math.rsqrt %242 : vector<16x1xf32>
    %244 = vector.broadcast %243 : vector<16x1xf32> to vector<16x32xf32>
    %245 = arith.mulf %240, %244 : vector<16x32xf32>
    %246 = vector.broadcast %224 : vector<1x32xf32> to vector<16x32xf32>
    %247 = arith.mulf %245, %246 : vector<16x32xf32>
    %248 = vector.broadcast %225 : vector<1x32xf32> to vector<16x32xf32>
    %249 = arith.addf %247, %248 : vector<16x32xf32>
    %c224 = arith.constant 224 : index
    %c0_78 = arith.constant 0 : index
    %250 = vector.load %arg2[%c224, %c0_78] : memref<400x96xbf16, #tpu.memory_space<vmem>>, vector<32x64xbf16>
    %c256 = arith.constant 256 : index
    %c0_79 = arith.constant 0 : index
    %251 = vector.load %arg2[%c256, %c0_79] : memref<400x96xbf16, #tpu.memory_space<vmem>>, vector<64x32xbf16>
    %252 = arith.truncf %249 : vector<16x32xf32> to vector<16x32xbf16>
    %cst_80 = arith.constant dense<0.000000e+00> : vector<16x64xf32>
    %253 = tpu.matmul %252, %250, %cst_80 {dimension_numbers = #tpu.dot_dimension_numbers<[1], [0], [0], [1], [0, 0, 1, 1], [], []>} : vector<16x32xbf16>, vector<32x64xbf16>, vector<16x64xf32> -> vector<16x64xf32>
    %c14 = arith.constant 14 : index
    %c0_81 = arith.constant 0 : index
    %254 = vector.load %arg3[%c14, %c0_81] : memref<24x96xf32, #tpu.memory_space<vmem>>, vector<1x64xf32>
    %255 = vector.broadcast %254 : vector<1x64xf32> to vector<16x64xf32>
    %256 = arith.addf %253, %255 : vector<16x64xf32>
    %cst_82 = arith.constant 5.000000e-01 : f32
    %257 = vector.broadcast %cst_82 : f32 to vector<16x64xf32>
    %258 = arith.mulf %257, %256 : vector<16x64xf32>
    %cst_83 = arith.constant 4.471500e-02 : f32
    %259 = vector.broadcast %cst_83 : f32 to vector<16x64xf32>
    %260 = arith.mulf %259, %256 : vector<16x64xf32>
    %261 = arith.mulf %260, %256 : vector<16x64xf32>
    %262 = arith.mulf %261, %256 : vector<16x64xf32>
    %263 = arith.addf %256, %262 : vector<16x64xf32>
    %cst_84 = arith.constant 0.797884583 : f32
    %264 = vector.broadcast %cst_84 : f32 to vector<16x64xf32>
    %265 = arith.mulf %264, %263 : vector<16x64xf32>
    %266 = math.tanh %265 : vector<16x64xf32>
    %cst_85 = arith.constant 1.000000e+00 : f32
    %267 = vector.broadcast %cst_85 : f32 to vector<16x64xf32>
    %268 = arith.addf %267, %266 : vector<16x64xf32>
    %269 = arith.mulf %258, %268 : vector<16x64xf32>
    %270 = arith.truncf %269 : vector<16x64xf32> to vector<16x64xbf16>
    %cst_86 = arith.constant dense<0.000000e+00> : vector<16x32xf32>
    %271 = tpu.matmul %270, %251, %cst_86 {dimension_numbers = #tpu.dot_dimension_numbers<[1], [0], [0], [1], [0, 0, 1, 1], [], []>} : vector<16x64xbf16>, vector<64x32xbf16>, vector<16x32xf32> -> vector<16x32xf32>
    %c15 = arith.constant 15 : index
    %c0_87 = arith.constant 0 : index
    %272 = vector.load %arg3[%c15, %c0_87] : memref<24x96xf32, #tpu.memory_space<vmem>>, vector<1x32xf32>
    %273 = vector.broadcast %272 : vector<1x32xf32> to vector<16x32xf32>
    %274 = arith.addf %271, %273 : vector<16x32xf32>
    %275 = arith.addf %249, %274 : vector<16x32xf32>
    %c16 = arith.constant 16 : index
    %c0_88 = arith.constant 0 : index
    %276 = vector.load %arg3[%c16, %c0_88] : memref<24x96xf32, #tpu.memory_space<vmem>>, vector<1x32xf32>
    %c17 = arith.constant 17 : index
    %c0_89 = arith.constant 0 : index
    %277 = vector.load %arg3[%c17, %c0_89] : memref<24x96xf32, #tpu.memory_space<vmem>>, vector<1x32xf32>
    %cst_90 = arith.constant dense<0.000000e+00> : vector<16xf32>
    %278 = vector.multi_reduction <add>, %275, %cst_90 [1] : vector<16x32xf32> to vector<16xf32>
    %279 = vector.shape_cast %278 : vector<16xf32> to vector<16x1xf32>
    %cst_91 = arith.constant 3.125000e-02 : f32
    %280 = vector.broadcast %cst_91 : f32 to vector<16x1xf32>
    %281 = arith.mulf %279, %280 : vector<16x1xf32>
    %282 = arith.mulf %275, %275 : vector<16x32xf32>
    %cst_92 = arith.constant dense<0.000000e+00> : vector<16xf32>
    %283 = vector.multi_reduction <add>, %282, %cst_92 [1] : vector<16x32xf32> to vector<16xf32>
    %284 = vector.shape_cast %283 : vector<16xf32> to vector<16x1xf32>
    %cst_93 = arith.constant 3.125000e-02 : f32
    %285 = vector.broadcast %cst_93 : f32 to vector<16x1xf32>
    %286 = arith.mulf %284, %285 : vector<16x1xf32>
    %287 = arith.mulf %281, %281 : vector<16x1xf32>
    %288 = arith.subf %286, %287 : vector<16x1xf32>
    %cst_94 = arith.constant 0.000000e+00 : f32
    %289 = vector.broadcast %cst_94 : f32 to vector<16x1xf32>
    %290 = arith.maximumf %288, %289 : vector<16x1xf32>
    %291 = vector.broadcast %281 : vector<16x1xf32> to vector<16x32xf32>
    %292 = arith.subf %275, %291 : vector<16x32xf32>
    %cst_95 = arith.constant 9.99999996E-13 : f32
    %293 = vector.broadcast %cst_95 : f32 to vector<16x1xf32>
    %294 = arith.addf %290, %293 : vector<16x1xf32>
    %295 = math.rsqrt %294 : vector<16x1xf32>
    %296 = vector.broadcast %295 : vector<16x1xf32> to vector<16x32xf32>
    %297 = arith.mulf %292, %296 : vector<16x32xf32>
    %298 = vector.broadcast %276 : vector<1x32xf32> to vector<16x32xf32>
    %299 = arith.mulf %297, %298 : vector<16x32xf32>
    %300 = vector.broadcast %277 : vector<1x32xf32> to vector<16x32xf32>
    %301 = arith.addf %299, %300 : vector<16x32xf32>
    %302 = vector.extract_strided_slice %301 {offsets = [0, 0], sizes = [1, 32], strides = [1, 1]} : vector<16x32xf32> to vector<1x32xf32>
    %303 = vector.extract_strided_slice %301 {offsets = [8, 0], sizes = [1, 32], strides = [1, 1]} : vector<16x32xf32> to vector<1x32xf32>
    %304 = tpu.concatenate %302, %303 in 0 : vector<1x32xf32>, vector<1x32xf32> -> vector<2x32xf32>
    %c320 = arith.constant 320 : index
    %c0_96 = arith.constant 0 : index
    %305 = vector.load %arg2[%c320, %c0_96] : memref<400x96xbf16, #tpu.memory_space<vmem>>, vector<32x32xbf16>
    %306 = arith.truncf %304 : vector<2x32xf32> to vector<2x32xbf16>
    %cst_97 = arith.constant dense<0.000000e+00> : vector<2x32xf32>
    %307 = tpu.matmul %306, %305, %cst_97 {dimension_numbers = #tpu.dot_dimension_numbers<[1], [0], [0], [1], [0, 0, 1, 1], [], []>} : vector<2x32xbf16>, vector<32x32xbf16>, vector<2x32xf32> -> vector<2x32xf32>
    %c18 = arith.constant 18 : index
    %c0_98 = arith.constant 0 : index
    %308 = vector.load %arg3[%c18, %c0_98] : memref<24x96xf32, #tpu.memory_space<vmem>>, vector<1x32xf32>
    %309 = vector.broadcast %308 : vector<1x32xf32> to vector<2x32xf32>
    %310 = arith.addf %307, %309 : vector<2x32xf32>
    %311 = math.tanh %310 : vector<2x32xf32>
    %c352 = arith.constant 352 : index
    %c0_99 = arith.constant 0 : index
    %312 = vector.load %arg2[%c352, %c0_99] : memref<400x96xbf16, #tpu.memory_space<vmem>>, vector<32x16xbf16>
    %313 = arith.truncf %311 : vector<2x32xf32> to vector<2x32xbf16>
    %cst_100 = arith.constant dense<0.000000e+00> : vector<2x16xf32>
    %314 = tpu.matmul %313, %312, %cst_100 {dimension_numbers = #tpu.dot_dimension_numbers<[1], [0], [0], [1], [0, 0, 1, 1], [], []>} : vector<2x32xbf16>, vector<32x16xbf16>, vector<2x16xf32> -> vector<2x16xf32>
    %c19 = arith.constant 19 : index
    %c0_101 = arith.constant 0 : index
    %315 = vector.load %arg3[%c19, %c0_101] : memref<24x96xf32, #tpu.memory_space<vmem>>, vector<1x16xf32>
    %316 = vector.broadcast %315 : vector<1x16xf32> to vector<2x16xf32>
    %317 = arith.addf %314, %316 : vector<2x16xf32>
    %cst_102 = arith.constant 0.000000e+00 : f32
    %318 = vector.broadcast %cst_102 : f32 to vector<2x16xf32>
    %319 = arith.maximumf %317, %318 : vector<2x16xf32>
    %c384 = arith.constant 384 : index
    %c0_103 = arith.constant 0 : index
    %320 = vector.load %arg2[%c384, %c0_103] : memref<400x96xbf16, #tpu.memory_space<vmem>>, vector<16x4xbf16>
    %321 = arith.truncf %319 : vector<2x16xf32> to vector<2x16xbf16>
    %cst_104 = arith.constant dense<0.000000e+00> : vector<2x4xf32>
    %322 = tpu.matmul %321, %320, %cst_104 {dimension_numbers = #tpu.dot_dimension_numbers<[1], [0], [0], [1], [0, 0, 1, 1], [], []>} : vector<2x16xbf16>, vector<16x4xbf16>, vector<2x4xf32> -> vector<2x4xf32>
    %c20 = arith.constant 20 : index
    %c0_105 = arith.constant 0 : index
    %323 = vector.load %arg3[%c20, %c0_105] : memref<24x96xf32, #tpu.memory_space<vmem>>, vector<1x4xf32>
    %324 = vector.broadcast %323 : vector<1x4xf32> to vector<2x4xf32>
    %325 = arith.addf %322, %324 : vector<2x4xf32>
    %cst_106 = arith.constant dense<0xFF800000> : vector<2xf32>
    %326 = vector.multi_reduction <maximumf>, %325, %cst_106 [1] : vector<2x4xf32> to vector<2xf32>
    %327 = vector.shape_cast %326 : vector<2xf32> to vector<2x1xf32>
    %328 = vector.broadcast %327 : vector<2x1xf32> to vector<2x4xf32>
    %329 = arith.subf %325, %328 : vector<2x4xf32>
    %330 = math.exp %329 : vector<2x4xf32>
    %cst_107 = arith.constant dense<0.000000e+00> : vector<2xf32>
    %331 = vector.multi_reduction <add>, %330, %cst_107 [1] : vector<2x4xf32> to vector<2xf32>
    %332 = vector.shape_cast %331 : vector<2xf32> to vector<2x1xf32>
    %333 = vector.broadcast %332 : vector<2x1xf32> to vector<2x4xf32>
    %334 = arith.divf %330, %333 : vector<2x4xf32>
    %c0_108 = arith.constant 0 : index
    %c0_109 = arith.constant 0 : index
    %335 = vector.load %arg4[%c0_108, %c0_109] : memref<2x4xf32, #tpu.memory_space<vmem>>, vector<2x4xf32>
    tpu.vector_store %arg4[%c0_108, %c0_109], %334 {strides = array<i32>} : memref<2x4xf32, #tpu.memory_space<vmem>>, vector<2x4xf32>,
    return
  }
}

</mosaic_0001>

<bundles_post_ra>
// kernel: tpu_custom_call.1
= control target key start
LH: loop header
LB: loop body
LE: loop exit
PB: predicated region body
PF: predicated region fallthrough
CT: control target
= control target key end

     0   :  { %vm25_vm0 = vcmask 261120   ;;  %s2360_s0 = inlined_call_operand.vmem [shape: f32[16,32], index: 0, kind: input, shape index: {}]   ;;  %s2361_s1 = inlined_call_operand.vmem [shape: f32[16,16], index: 1, kind: input, shape index: {}]   ;;  %s2362_s2 = inlined_call_operand.vmem [shape: bf16[400,96], index: 2, kind: input, shape index: {}]   ;;  %s2363_s3 = inlined_call_operand.vmem [shape: f32[24,96], index: 3, kind: input, shape index: {}]   ;;  %s2364_s4 = inlined_call_operand.hbm [shape: f32[2,4], index: 4, kind: output, shape index: {}]  }
   0x1   :  { %v21_v0 = vld [vmem:[%s2360_s0] sm:$0xff]  ;;  %v22_v1 = vld [vmem:[%s2360_s0 + $0x8] sm:$0xff] }
   0x2   :  { %v26_v2 = vsel %vm25_vm0, %v21_v0, 0.0  ;;  %v34_v3 = vmul.f32 %v21_v0, %v21_v0  ;;  %v29_v4 = vsel %vm25_vm0, %v22_v1, 0.0  ;;  %v35_v5 = vmul.f32 %v22_v1, %v22_v1 }
   0x3   :  { %27 = vadd.xlane.f32.xlu0 %v26_v2 }
   0x4   :  { %v36_v6 = vsel %vm25_vm0, %v34_v3, 0.0  ;;  %v39_v7 = vsel %vm25_vm0, %v35_v5, 0.0 }
   0x5   :  { %37 = vadd.xlane.f32.xlu1 %v36_v6 }
   0x7   :  { %30 = vadd.xlane.f32.xlu0 %v29_v4 }
   0x9   :  { %40 = vadd.xlane.f32.xlu1 %v39_v7 }
   0xa   :  { %9 = vsyncpa [#allocation3], 0  ;;  %v1871_v8 = vld [vmem:[%s2362_s2 + $0x8] sm:$0xff]   ;;  %v1984_v9 = vmov 0.0   ;;  %vm1985_vm1 = vmmov 0   ;;  %v1872_v10 = vld [vmem:[%s2362_s2] sm:$0xff]  }
   0xb   :  { %1710 = vmatprep.subr.bf16.mxu0 %v1984_v9  ;;  %1714 = vmatprep.mubr.msk.bf16.mxu0 %vm1985_vm1, %v1984_v9  ;;  %v1593_v30 = vld [vmem:[%s2363_s3] ss:$0 sm:$0xff]  ;;  %v1594_v35 = vld [vmem:[%s2363_s3 + $0x1] ss:$0 sm:$0xff]  ;;  %v1595_v41 = vld [vmem:[%s2363_s3 + $0x2] ss:$0 sm:$0xff] }
   0xc   :  { %1711 = vmatpush3.bf16.msra.mxu0 %v1871_v8  ;;  %1718 = vmatprep.subr.bf16.mxu1 %v1984_v9  ;;  %s1986_s28 = smov 80   ;;  %s1987_s29 = smov 96   ;;  %vm143_vm2 = vcmask 130048   ;;  %v2080_v56 = vld [vmem:[%s2361_s1] sm:$0xff]  ;;  %v2086_v60 = vld [vmem:[%s2361_s1 + $0x8] sm:$0xff]  ;;  %vm629_vm3 = vcmask 523264  }
   0xd   :  { %1712 = vmatprep.subr.bf16.mxu0 %v1984_v9  ;;  %1720 = vmatprep.mubr.msk.bf16.mxu1 %vm1985_vm1, %v1984_v9  ;;  %s1988_s30 = smov 112   ;;  %s1989_s1 = smov 64   ;;  %vm1375_vm4 = vcmask 1040384   ;;  %vm1566_vm5 = vcmask 25600  }
   0xe   :  { %s1990_s9 = smov 48   ;;  %s1991_s14 = smov 16  }
  0x10   :  { %1713 = vmatpush3.bf16.msra.mxu0 %v1872_v10 }
  0x11   :  { %1724 = vmatprep.subr.bf16.mxu0 %v1984_v9 }
  0x8c   :  { %v28_v11 = vpop.xlane.xlu0 %27 }
  0x8d   :  { %v32_v12 = vmul.f32 0.03125, %v28_v11 }
  0x8e   :  { %v38_v13 = vpop.xlane.xlu1 %37 }
  0x8f   :  { %v44_v14 = vmul.f32 %v32_v12, %v32_v12  ;;  %v42_v15 = vmul.f32 0.03125, %v38_v13  ;;  %v50_v27 = vsub.f32 %v21_v0, %v32_v12 }
  0x90   :  { %v31_v16 = vpop.xlane.xlu0 %30 }
  0x91   :  { %v46_v17 = vsub.f32 %v42_v15, %v44_v14  ;;  %v33_v18 = vmul.f32 0.03125, %v31_v16 }
  0x92   :  { %v41_v19 = vpop.xlane.xlu1 %40 }
  0x93   :  { %v48_v20 = vmax.f32 %v46_v17, 0.0  ;;  %v45_v21 = vmul.f32 %v33_v18, %v33_v18  ;;  %v43_v22 = vmul.f32 0.03125, %v41_v19  ;;  %v51_v31 = vsub.f32 %v22_v1, %v33_v18 }
  0x95   :  { %v52_v23 = vadd.f32 1e-12, %v48_v20  ;;  %v47_v24 = vsub.f32 %v43_v22, %v45_v21 }
  0x97   :  { %1896 = vrsqrt.f32 %v52_v23  ;;  %v49_v25 = vmax.f32 %v47_v24, 0.0 }
  0x99   :  { %v53_v26 = vadd.f32 1e-12, %v49_v25 }
  0x9b   :  { %1898 = vrsqrt.f32 %v53_v26 }
  0xa4   :  { %v1897_v28 = vpop.eup %1896 }
  0xa5   :  { %v56_v29 = vmul.f32 %v1897_v28, %v50_v27 }
  0xa7   :  { %v62_v34 = vmul.f32 %v1593_v30, %v56_v29 }
  0xa8   :  { %v1899_v32 = vpop.eup %1898 }
  0xa9   :  { %v57_v33 = vmul.f32 %v1899_v32, %v51_v31  ;;  %v2048_v37 = vadd.f32 %v1594_v35, %v62_v34 }
  0xab   :  { %v63_v36 = vmul.f32 %v1593_v30, %v57_v33 }
  0xad   :  { %v2050_v38 = vadd.f32 %v1594_v35, %v63_v36 }
  0xaf   :  { %v74_v39 = vpack.c.bf16 %v2050_v38, %v2048_v37 }
  0xb1   :  { %1715 = vmatmul.mubr.msk.bf16.vlgmr.msra.gmra.mxu0 %vm25_vm0, %v74_v39 }
  0xb2   :  { %1726 = vmatprep.mubr.msk.bf16.mxu0 %vm1985_vm1, %v1984_v9 }
 0x171   :  { %v129_v40 = vpop.f32.mrf.mxu0 }
 0x172   :  { %v130_v44 = vadd.f32 %v1595_v41, %v129_v40 }
 0x173   :  { %v1716_v42 = vpop.f32.mrf.mxu0 }
 0x174   :  { %v136_v49 = vmul.f32 0.25, %v130_v44 }
 0x175   :  { %v132_v43 = vpop.f32.mrf.mxu0 }
 0x176   :  { %v133_v45 = vadd.f32 %v1595_v41, %v132_v43 }
 0x177   :  { %v1717_v46 = vpop.f32.mrf.mxu0 }
 0x178   :  { %v137_v47 = vmul.f32 0.25, %v133_v45  ;;  %v2060_v48 = vpack.c.bf16 %v133_v45, %v130_v44 }
 0x17a   :  { %264 = vrot.lane.b32.xlu1 %v2060_v48, %s1986_s28  ;;  %141 = vrot.lane.b32.xlu0 %v2060_v48, %s1987_s29  ;;  %v138_v50 = vpack.c.bf16 %v137_v47, %v136_v49  ;;  %v1873_v49 = vld [vmem:[%s2362_s2 + $0x18] sm:$0xff]  }
 0x17e   :  { %262 = vrot.lane.b32.xlu1 %v138_v50, %s1988_s30 }
 0x1ec   :  { %v142_v51 = vpop.permute.xlu0 %141  ;;  %v265_v53 = vpop.permute.xlu1 %264 }
 0x1ed   :  { %v148_v52 = vsel %vm143_vm2, %v142_v51, 0  ;;  %v270_v54 = vsel %vm143_vm2, %v265_v53, 0 }
 0x1ee   :  { %1719 = vmatpush3.bf16.xpose.msra.mxu1 %v148_v52  ;;  %v1874_v52 = vld [vmem:[%s2362_s2 + $0x10] sm:$0xff]  }
 0x1ef   :  { %1730 = vmatprep.subr.bf16.mxu1 %v1984_v9 }
 0x1f0   :  { %v263_v55 = vpop.permute.xlu1 %262 }
 0x1f5   :  { %1721 = vmatmul.mubr.msk.bf16.vlgmr.msra.gmra.mxu1 %vm143_vm2, %v138_v50 }
 0x1f6   :  { %1731 = vmatpush3.bf16.xpose.msra.mxu1 %v270_v54  ;;  %1732 = vmatprep.mubr.msk.bf16.mxu1 %vm1985_vm1, %v1984_v9 }
 0x1f7   :  { %1742 = vmatprep.subr.bf16.mxu1 %v1984_v9 }
 0x1fd   :  { %1733 = vmatmul.mubr.msk.bf16.vlgmr.msra.gmra.mxu1 %vm143_vm2, %v263_v55 }
 0x1fe   :  { %1746 = vmatprep.mubr.msk.bf16.mxu1 %vm1985_vm1, %v1984_v9  ;;  %1743 = vmatpush3.bf16.msra.mxu1 %v1873_v49 }
 0x1ff   :  { %1744 = vmatprep.subr.bf16.mxu1 %v1984_v9 }
 0x202   :  { %1745 = vmatpush3.bf16.msra.mxu1 %v1874_v52  ;;  %v1878_v52 = vld [vmem:[%s2362_s2 + $0x40] sm:$0xff]  }
 0x203   :  { %1758 = vmatprep.subr.bf16.mxu1 %v1984_v9 }
 0x2b5   :  { %v184_v57 = vpop.f32.mrf.mxu1 }
 0x2b6   :  { %v185_v58 = vadd.f32 %v184_v57, %v2080_v56 }
 0x2b7   :  { %v1722_v59 = vpop.f32.mrf.mxu1 }
 0x2b8   :  { %v191_v61 = vsel %vm143_vm2, %v185_v58, -inf }
 0x2b9   :  { %v187_v62 = vpop.f32.mrf.mxu1  ;;  %192 = vmax.xlane.f32.xlu1 %v191_v61 }
 0x2ba   :  { %v188_v63 = vadd.f32 %v187_v62, %v2086_v60 }
 0x2bb   :  { %v1723_v0 = vpop.f32.mrf.mxu1 }
 0x2bc   :  { %v194_v1 = vsel %vm143_vm2, %v188_v63, -inf }
 0x2bd   :  { %v306_v2 = vpop.f32.mrf.mxu1  ;;  %195 = vmax.xlane.f32.xlu0 %v194_v1 }
 0x2be   :  { %v307_v3 = vadd.f32 %v306_v2, %v2080_v56 }
 0x2bf   :  { %v1734_v4 = vpop.f32.mrf.mxu1 }
 0x2c0   :  { %v313_v5 = vsel %vm143_vm2, %v307_v3, -inf  ;;  %v1603_v4 = vld [vmem:[%s2363_s3 + $0x3] ss:$0 sm:$0xff] }
 0x2c1   :  { %v309_v6 = vpop.f32.mrf.mxu1  ;;  %314 = vmax.xlane.f32.xlu0 %v313_v5 }
 0x2c2   :  { %v310_v7 = vadd.f32 %v309_v6, %v2086_v60 }
 0x2c3   :  { %v1735_v8 = vpop.f32.mrf.mxu1 }
 0x2c4   :  { %v316_v10 = vsel %vm143_vm2, %v310_v7, -inf }
 0x2c5   :  { %317 = vmax.xlane.f32.xlu0 %v316_v10 }
 0x342   :  { %v193_v11 = vpop.xlane.xlu1 %192 }
 0x343   :  { %v197_v12 = vsub.f32 %v185_v58, %v193_v11 }
 0x345   :  { %v199_v13 = vmul.f32 1.442695, %v197_v12 }
 0x346   :  { %v196_v14 = vpop.xlane.xlu0 %195 }
 0x347   :  { %1900 = vpow2.f32 %v199_v13  ;;  %v198_v15 = vsub.f32 %v188_v63, %v196_v14 }
 0x349   :  { %v201_v16 = vmul.f32 1.442695, %v198_v15 }
 0x34a   :  { %v315_v17 = vpop.xlane.xlu0 %314 }
 0x34b   :  { %1902 = vpow2.f32 %v201_v16  ;;  %v319_v18 = vsub.f32 %v307_v3, %v315_v17 }
 0x34d   :  { %v321_v19 = vmul.f32 1.442695, %v319_v18 }
 0x34e   :  { %v318_v20 = vpop.xlane.xlu0 %317 }
 0x34f   :  { %1904 = vpow2.f32 %v321_v19  ;;  %v320_v21 = vsub.f32 %v310_v7, %v318_v20 }
 0x351   :  { %v323_v22 = vmul.f32 1.442695, %v320_v21 }
 0x353   :  { %1906 = vpow2.f32 %v323_v22 }
 0x354   :  { %v1901_v23 = vpop.eup %1900 }
 0x355   :  { %v203_v24 = vsel %vm143_vm2, %v1901_v23, 0.0 }
 0x356   :  { %204 = vadd.xlane.f32.xlu1 %v203_v24 }
 0x358   :  { %v1903_v25 = vpop.eup %1902 }
 0x359   :  { %v206_v26 = vsel %vm143_vm2, %v1903_v25, 0.0 }
 0x35a   :  { %207 = vadd.xlane.f32.xlu0 %v206_v26 }
 0x35c   :  { %v1905_v27 = vpop.eup %1904 }
 0x35d   :  { %v325_v28 = vsel %vm143_vm2, %v1905_v27, 0.0 }
 0x35e   :  { %326 = vadd.xlane.f32.xlu1 %v325_v28 }
 0x360   :  { %v1907_v29 = vpop.eup %1906 }
 0x361   :  { %v328_v30 = vsel %vm143_vm2, %v1907_v29, 0.0 }
 0x362   :  { %329 = vadd.xlane.f32.xlu0 %v328_v30 }
 0x36f   :  { %214 = vrot.lane.b32.xlu1 %v2060_v48, %s1989_s1 }
 0x378   :  { %336 = vrot.lane.b32.xlu0 %v2060_v48, %s1990_s9 }
 0x3df   :  { %v205_v31 = vpop.xlane.xlu1 %204 }
 0x3e0   :  { %1908 = vrcp.f32 %v205_v31 }
 0x3e3   :  { %v208_v32 = vpop.xlane.xlu0 %207 }
 0x3e4   :  { %1910 = vrcp.f32 %v208_v32 }
 0x3e7   :  { %v327_v33 = vpop.xlane.xlu1 %326 }
 0x3e8   :  { %1912 = vrcp.f32 %v327_v33 }
 0x3eb   :  { %v330_v34 = vpop.xlane.xlu0 %329  ;;  %v215_v35 = vpop.permute.xlu1 %214 }
 0x3ec   :  { %1914 = vrcp.f32 %v330_v34  ;;  %1725 = vmatpush3.bf16.msra.mxu0 %v215_v35 }
 0x3ed   :  { %1736 = vmatprep.subr.bf16.mxu0 %v1984_v9  ;;  %v1909_v36 = vpop.eup %1908 }
 0x3ee   :  { %v210_v40 = vmul.f32 %v1909_v36, %v1901_v23 }
 0x3ef   :  { %v337_v43 = vpop.permute.xlu0 %336 }
 0x3f1   :  { %v1911_v39 = vpop.eup %1910 }
 0x3f2   :  { %v212_v41 = vmul.f32 %v1911_v39, %v1903_v25 }
 0x3f4   :  { %v213_v42 = vpack.c.bf16 %v212_v41, %v210_v40  ;;  %v1607_v40 = vld [vmem:[%s2363_s3 + $0x4] ss:$0 sm:$0xff] }
 0x3f5   :  { %v1913_v44 = vpop.eup %1912 }
 0x3f6   :  { %1727 = vmatmul.mubr.msk.bf16.vlgmr.msra.gmra.mxu0 %vm143_vm2, %v213_v42  ;;  %v332_v46 = vmul.f32 %v1913_v44, %v1905_v27 }
 0x3f7   :  { %1737 = vmatpush3.bf16.msra.mxu0 %v337_v43  ;;  %1738 = vmatprep.mubr.msk.bf16.mxu0 %vm1985_vm1, %v1984_v9 }
 0x3f8   :  { %1750 = vmatprep.subr.bf16.mxu0 %v1984_v9 }
 0x3f9   :  { %v1915_v45 = vpop.eup %1914 }
 0x3fa   :  { %v334_v47 = vmul.f32 %v1915_v45, %v1907_v29 }
 0x3fc   :  { %v335_v48 = vpack.c.bf16 %v334_v47, %v332_v46  ;;  %v1608_v46 = vld [vmem:[%s2363_s3 + $0x5] ss:$0 sm:$0xff] }
 0x3fe   :  { %1739 = vmatmul.mubr.msk.bf16.vlgmr.msra.gmra.mxu0 %vm143_vm2, %v335_v48 }
 0x3ff   :  { %1754 = vmatprep.mubr.msk.bf16.mxu0 %vm1985_vm1, %v1984_v9 }
 0x4b6   :  { %v254_v50 = vpop.f32.mrf.mxu0 }
 0x4b8   :  { %v1728_v51 = vpop.f32.mrf.mxu0 }
 0x4b9   :  { %v1877_v51 = vld [vmem:[%s2362_s2 + $0x48] sm:$0xff]  }
 0x4ba   :  { %v257_v53 = vpop.f32.mrf.mxu0 }
 0x4bc   :  { %v1729_v54 = vpop.f32.mrf.mxu0 }
 0x4bd   :  { %v1880_v54 = vld [vmem:[%s2362_s2 + $0x30] sm:$0xff]  }
 0x4be   :  { %v376_v55 = vpop.f32.mrf.mxu0 }
 0x4c0   :  { %v1740_v57 = vpop.f32.mrf.mxu0 }
 0x4c2   :  { %v379_v58 = vpop.f32.mrf.mxu0 }
 0x4c3   :  { %v1861_v59 = vpack.i.bf16 %v379_v58, %v376_v55  ;;  %v1609_v55 = vld [vmem:[%s2363_s3 + $0x6] ss:$0 sm:$0xff] }
 0x4c4   :  { %v1741_v61 = vpop.f32.mrf.mxu0 }
 0x4c5   :  { %1862 = vrot.lane.b32.xlu1 %v1861_v59, %s1991_s14 }
 0x537   :  { %v1863_v62 = vpop.permute.xlu1 %1862 }
 0x538   :  { %v1865_v63 = vunpack.i.h.bf16 %v1863_v62  ;;  %v1864_v0 = vunpack.i.l.bf16 %v1863_v62 }
 0x53a   :  { %v392_v1 = vsel %vm143_vm2, %v257_v53, %v1865_v63  ;;  %v391_v2 = vsel %vm143_vm2, %v254_v50, %v1864_v0  ;;  %v1879_v53 = vld [vmem:[%s2362_s2 + $0x38] sm:$0xff]  }
 0x53b   :  { %v397_v3 = vpack.c.bf16 %v392_v1, %v391_v2 }
 0x53d   :  { %1747 = vmatmul.mubr.msk.bf16.vlgmr.msra.gmra.mxu1 %vm25_vm0, %v397_v3 }
 0x53e   :  { %1766 = vmatprep.mubr.msk.bf16.mxu1 %vm1985_vm1, %v1984_v9  ;;  %1759 = vmatpush3.bf16.msra.mxu1 %v1877_v51 }
 0x53f   :  { %1760 = vmatprep.subr.bf16.mxu1 %v1984_v9 }
 0x542   :  { %1761 = vmatpush3.bf16.msra.mxu1 %v1878_v52 }
 0x543   :  { %1762 = vmatprep.subr.bf16.mxu1 %v1984_v9 }
 0x546   :  { %1763 = vmatpush3.bf16.msra.mxu1 %v1879_v53 }
 0x547   :  { %1764 = vmatprep.subr.bf16.mxu1 %v1984_v9 }
 0x54a   :  { %1765 = vmatpush3.bf16.msra.mxu1 %v1880_v54 }
 0x54b   :  { %1784 = vmatprep.subr.bf16.mxu1 %v1984_v9 }
 0x5fd   :  { %v452_v5 = vpop.f32.mrf.mxu1 }
 0x5fe   :  { %v453_v6 = vadd.f32 %v1603_v4, %v452_v5 }
 0x5ff   :  { %v1748_v7 = vpop.f32.mrf.mxu1 }
 0x600   :  { %v459_v8 = vadd.f32 %v453_v6, %v2048_v37  ;;  %v1875_v37 = vld [vmem:[%s2362_s2 + $0x28] sm:$0xff]  }
 0x601   :  { %v455_v10 = vpop.f32.mrf.mxu1  ;;  %1751 = vmatpush3.bf16.msra.mxu0 %v1875_v37  ;;  %v1613_v37 = vld [vmem:[%s2363_s3 + $0x7] ss:$0 sm:$0xff] }
 0x602   :  { %v456_v11 = vadd.f32 %v1603_v4, %v455_v10  ;;  %v463_v12 = vsel %vm25_vm0, %v459_v8, 0.0  ;;  %v471_v17 = vmul.f32 %v459_v8, %v459_v8  ;;  %1752 = vmatprep.subr.bf16.mxu0 %v1984_v9 }
 0x603   :  { %464 = vadd.xlane.f32.xlu1 %v463_v12  ;;  %v1749_v13 = vpop.f32.mrf.mxu1 }
 0x604   :  { %v460_v14 = vadd.f32 %v456_v11, %v2050_v38  ;;  %v473_v19 = vsel %vm25_vm0, %v471_v17, 0.0  ;;  %v1876_v38 = vld [vmem:[%s2362_s2 + $0x20] sm:$0xff]  }
 0x605   :  { %1753 = vmatpush3.bf16.msra.mxu0 %v1876_v38 }
 0x606   :  { %v466_v15 = vsel %vm25_vm0, %v460_v14, 0.0  ;;  %v472_v16 = vmul.f32 %v460_v14, %v460_v14  ;;  %1770 = vmatprep.subr.bf16.mxu0 %v1984_v9 }
 0x607   :  { %467 = vadd.xlane.f32.xlu0 %v466_v15 }
 0x608   :  { %v476_v18 = vsel %vm25_vm0, %v472_v16, 0.0 }
 0x609   :  { %477 = vadd.xlane.f32.xlu1 %v476_v18 }
 0x60b   :  { %474 = vadd.xlane.f32.xlu0 %v473_v19 }
 0x68c   :  { %v465_v20 = vpop.xlane.xlu1 %464 }
 0x68d   :  { %v469_v22 = vmul.f32 0.03125, %v465_v20 }
 0x68f   :  { %v481_v28 = vmul.f32 %v469_v22, %v469_v22  ;;  %v487_v41 = vsub.f32 %v459_v8, %v469_v22 }
 0x690   :  { %v468_v21 = vpop.xlane.xlu0 %467 }
 0x691   :  { %v470_v23 = vmul.f32 0.03125, %v468_v21 }
 0x692   :  { %v478_v24 = vpop.xlane.xlu1 %477 }
 0x693   :  { %v482_v25 = vmul.f32 %v470_v23, %v470_v23  ;;  %v480_v26 = vmul.f32 0.03125, %v478_v24  ;;  %v488_v36 = vsub.f32 %v460_v14, %v470_v23 }
 0x694   :  { %v475_v27 = vpop.xlane.xlu0 %474 }
 0x695   :  { %v484_v29 = vsub.f32 %v480_v26, %v482_v25  ;;  %v479_v30 = vmul.f32 0.03125, %v475_v27 }
 0x697   :  { %v486_v31 = vmax.f32 %v484_v29, 0.0  ;;  %v483_v32 = vsub.f32 %v479_v30, %v481_v28 }
 0x699   :  { %v490_v33 = vadd.f32 1e-12, %v486_v31  ;;  %v485_v34 = vmax.f32 %v483_v32, 0.0 }
 0x69b   :  { %1916 = vrsqrt.f32 %v490_v33  ;;  %v489_v35 = vadd.f32 1e-12, %v485_v34  ;;  %v1881_v33 = vld [vmem:[%s2362_s2 + $0x58] sm:$0xff]   ;;  %v1882_v34 = vld [vmem:[%s2362_s2 + $0x50] sm:$0xff]  }
 0x69d   :  { %1918 = vrsqrt.f32 %v489_v35 }
 0x6a8   :  { %v1917_v39 = vpop.eup %1916 }
 0x6a9   :  { %v494_v42 = vmul.f32 %v1917_v39, %v488_v36 }
 0x6aa   :  { %v1919_v43 = vpop.eup %1918 }
 0x6ab   :  { %v493_v44 = vmul.f32 %v1919_v43, %v487_v41  ;;  %v500_v45 = vmul.f32 %v1607_v40, %v494_v42 }
 0x6ad   :  { %v499_v47 = vmul.f32 %v1607_v40, %v493_v44  ;;  %v506_v49 = vadd.f32 %v1608_v46, %v500_v45 }
 0x6af   :  { %v505_v48 = vadd.f32 %v1608_v46, %v499_v47 }
 0x6b1   :  { %v519_v50 = vpack.c.bf16 %v506_v49, %v505_v48 }
 0x6b3   :  { %1755 = vmatmul.mubr.msk.bf16.vlgmr.msra.gmra.mxu0 %vm25_vm0, %v519_v50 }
 0x6b4   :  { %1774 = vmatprep.mubr.msk.bf16.mxu0 %vm1985_vm1, %v1984_v9  ;;  %1771 = vmatpush3.bf16.msra.mxu0 %v1881_v33 }
 0x6b5   :  { %1772 = vmatprep.subr.bf16.mxu0 %v1984_v9 }
 0x6b8   :  { %1773 = vmatpush3.bf16.msra.mxu0 %v1882_v34 }
 0x6b9   :  { %1778 = vmatprep.subr.bf16.mxu0 %v1984_v9 }
 0x773   :  { %v574_v57 = vpop.f32.mrf.mxu0 }
 0x774   :  { %v575_v58 = vadd.f32 %v1609_v55, %v574_v57  ;;  %v1619_v57 = vld [vmem:[%s2363_s3 + $0x8] ss:$0 sm:$0xff] }
 0x775   :  { %v1756_v59 = vpop.f32.mrf.mxu0 }
 0x776   :  { %v583_v61 = vmul.f32 0.044715, %v575_v58  ;;  %v581_v14 = vmul.f32 0.5, %v575_v58 }
 0x777   :  { %v577_v62 = vpop.f32.mrf.mxu0 }
 0x778   :  { %v585_v63 = vmul.f32 %v583_v61, %v575_v58  ;;  %v578_v0 = vadd.f32 %v1609_v55, %v577_v62 }
 0x779   :  { %v1757_v1 = vpop.f32.mrf.mxu0 }
 0x77a   :  { %v587_v2 = vmul.f32 %v585_v63, %v575_v58  ;;  %v584_v3 = vmul.f32 0.044715, %v578_v0  ;;  %v582_v15 = vmul.f32 0.5, %v578_v0  ;;  %v1620_v63 = vld [vmem:[%s2363_s3 + $0x9] ss:$0 sm:$0xff] }
 0x77c   :  { %v589_v4 = vadd.f32 %v587_v2, %v575_v58  ;;  %v586_v5 = vmul.f32 %v584_v3, %v578_v0 }
 0x77e   :  { %v591_v6 = vmul.f32 0.7978846, %v589_v4  ;;  %v588_v7 = vmul.f32 %v586_v5, %v578_v0  ;;  %v1621_v5 = vld [vmem:[%s2363_s3 + $0xa] ss:$0 sm:$0xff] }
 0x780   :  { %1920 = vtanh.f32 %v591_v6  ;;  %v590_v8 = vadd.f32 %v588_v7, %v578_v0 }
 0x782   :  { %v592_v10 = vmul.f32 0.7978846, %v590_v8 }
 0x784   :  { %1922 = vtanh.f32 %v592_v10 }
 0x78d   :  { %v1921_v11 = vpop.eup %1920 }
 0x78e   :  { %v595_v12 = vadd.f32 1.0, %v1921_v11 }
 0x790   :  { %v597_v17 = vmul.f32 %v595_v12, %v581_v14 }
 0x791   :  { %v1923_v13 = vpop.eup %1922 }
 0x792   :  { %v596_v16 = vadd.f32 1.0, %v1923_v13 }
 0x794   :  { %v598_v18 = vmul.f32 %v596_v16, %v582_v15 }
 0x796   :  { %v599_v19 = vpack.c.bf16 %v598_v18, %v597_v17 }
 0x798   :  { %1767 = vmatmul.mubr.msk.bf16.vlgmr.msra.gmra.mxu1 %vm629_vm3, %v599_v19 }
 0x799   :  { %1786 = vmatprep.mubr.msk.bf16.mxu1 %vm1985_vm1, %v1984_v9 }
 0x858   :  { %v667_v38 = vpop.f32.mrf.mxu1 }
 0x859   :  { %v668_v20 = vadd.f32 %v1613_v37, %v667_v38 }
 0x85a   :  { %v1768_v21 = vpop.f32.mrf.mxu1 }
 0x85b   :  { %v674_v22 = vadd.f32 %v668_v20, %v505_v48 }
 0x85c   :  { %v670_v23 = vpop.f32.mrf.mxu1 }
 0x85d   :  { %v671_v24 = vadd.f32 %v1613_v37, %v670_v23  ;;  %v678_v25 = vsel %vm25_vm0, %v674_v22, 0.0  ;;  %v686_v26 = vmul.f32 %v674_v22, %v674_v22 }
 0x85e   :  { %679 = vadd.xlane.f32.xlu0 %v678_v25  ;;  %v1769_v27 = vpop.f32.mrf.mxu1 }
 0x85f   :  { %v675_v28 = vadd.f32 %v671_v24, %v506_v49  ;;  %v688_v29 = vsel %vm25_vm0, %v686_v26, 0.0 }
 0x861   :  { %v681_v30 = vsel %vm25_vm0, %v675_v28, 0.0  ;;  %v687_v31 = vmul.f32 %v675_v28, %v675_v28 }
 0x862   :  { %689 = vadd.xlane.f32.xlu0 %v688_v29  ;;  %682 = vadd.xlane.f32.xlu1 %v681_v30 }
 0x863   :  { %v691_v32 = vsel %vm25_vm0, %v687_v31, 0.0 }
 0x866   :  { %692 = vadd.xlane.f32.xlu1 %v691_v32 }
 0x8e7   :  { %v680_v35 = vpop.xlane.xlu0 %679 }
 0x8e8   :  { %v684_v36 = vmul.f32 0.03125, %v680_v35 }
 0x8ea   :  { %v696_v41 = vmul.f32 %v684_v36, %v684_v36  ;;  %v702_v53 = vsub.f32 %v674_v22, %v684_v36 }
 0x8eb   :  { %v690_v39 = vpop.xlane.xlu0 %689  ;;  %v683_v40 = vpop.xlane.xlu1 %682 }
 0x8ec   :  { %v694_v42 = vmul.f32 0.03125, %v690_v39  ;;  %v685_v43 = vmul.f32 0.03125, %v683_v40 }
 0x8ee   :  { %v698_v44 = vsub.f32 %v694_v42, %v696_v41  ;;  %v697_v47 = vmul.f32 %v685_v43, %v685_v43  ;;  %v703_v58 = vsub.f32 %v675_v28, %v685_v43 }
 0x8ef   :  { %v693_v45 = vpop.xlane.xlu1 %692 }
 0x8f0   :  { %v700_v46 = vmax.f32 %v698_v44, 0.0  ;;  %v695_v48 = vmul.f32 0.03125, %v693_v45 }
 0x8f2   :  { %v704_v49 = vadd.f32 1e-12, %v700_v46  ;;  %v699_v50 = vsub.f32 %v695_v48, %v697_v47 }
 0x8f4   :  { %1924 = vrsqrt.f32 %v704_v49  ;;  %v701_v51 = vmax.f32 %v699_v50, 0.0 }
 0x8f6   :  { %v705_v52 = vadd.f32 1e-12, %v701_v51 }
 0x8f8   :  { %1926 = vrsqrt.f32 %v705_v52 }
 0x901   :  { %v1925_v54 = vpop.eup %1924 }
 0x902   :  { %v708_v55 = vmul.f32 %v1925_v54, %v702_v53 }
 0x904   :  { %v714_v62 = vmul.f32 %v1619_v57, %v708_v55 }
 0x905   :  { %v1927_v59 = vpop.eup %1926 }
 0x906   :  { %v709_v61 = vmul.f32 %v1927_v59, %v703_v58  ;;  %v2194_v1 = vadd.f32 %v1620_v63, %v714_v62 }
 0x908   :  { %v715_v0 = vmul.f32 %v1619_v57, %v709_v61 }
 0x90a   :  { %v2196_v2 = vadd.f32 %v1620_v63, %v715_v0 }
 0x90c   :  { %v726_v3 = vpack.c.bf16 %v2196_v2, %v2194_v1 }
 0x90e   :  { %1775 = vmatmul.mubr.msk.bf16.vlgmr.msra.gmra.mxu0 %vm25_vm0, %v726_v3 }
 0x90f   :  { %1780 = vmatprep.mubr.msk.bf16.mxu0 %vm1985_vm1, %v1984_v9 }
 0x9ce   :  { %v781_v4 = vpop.f32.mrf.mxu0 }
 0x9cf   :  { %v782_v8 = vadd.f32 %v1621_v5, %v781_v4 }
 0x9d0   :  { %v1776_v6 = vpop.f32.mrf.mxu0 }
 0x9d1   :  { %v788_v14 = vmul.f32 0.25, %v782_v8 }
 0x9d2   :  { %v784_v7 = vpop.f32.mrf.mxu0 }
 0x9d3   :  { %v785_v10 = vadd.f32 %v1621_v5, %v784_v7 }
 0x9d4   :  { %v1777_v11 = vpop.f32.mrf.mxu0 }
 0x9d5   :  { %v789_v12 = vmul.f32 0.25, %v785_v10  ;;  %v2206_v13 = vpack.c.bf16 %v785_v10, %v782_v8 }
 0x9d7   :  { %915 = vrot.lane.b32.xlu1 %v2206_v13, %s1986_s28  ;;  %793 = vrot.lane.b32.xlu0 %v2206_v13, %s1987_s29  ;;  %v790_v15 = vpack.c.bf16 %v789_v12, %v788_v14  ;;  %v1883_v12 = vld [vmem:[%s2362_s2 + $0x68] sm:$0xff]  }
 0x9db   :  { %913 = vrot.lane.b32.xlu1 %v790_v15, %s1988_s30 }
 0xa49   :  { %v794_v16 = vpop.permute.xlu0 %793  ;;  %v916_v18 = vpop.permute.xlu1 %915 }
 0xa4a   :  { %v799_v17 = vsel %vm143_vm2, %v794_v16, 0  ;;  %v921_v19 = vsel %vm143_vm2, %v916_v18, 0 }
 0xa4b   :  { %1779 = vmatpush3.bf16.xpose.msra.mxu0 %v799_v17 }
 0xa4c   :  { %1790 = vmatprep.subr.bf16.mxu0 %v1984_v9 }
 0xa4d   :  { %v914_v37 = vpop.permute.xlu1 %913 }
 0xa52   :  { %1781 = vmatmul.mubr.msk.bf16.vlgmr.msra.gmra.mxu0 %vm143_vm2, %v790_v15  ;;  %v1884_v15 = vld [vmem:[%s2362_s2 + $0x60] sm:$0xff]  }
 0xa53   :  { %1791 = vmatpush3.bf16.xpose.msra.mxu0 %v921_v19  ;;  %1792 = vmatprep.mubr.msk.bf16.mxu0 %vm1985_vm1, %v1984_v9 }
 0xa54   :  { %1802 = vmatprep.subr.bf16.mxu0 %v1984_v9 }
 0xa5a   :  { %1793 = vmatmul.mubr.msk.bf16.vlgmr.msra.gmra.mxu0 %vm143_vm2, %v914_v37 }
 0xa5b   :  { %1806 = vmatprep.mubr.msk.bf16.mxu0 %vm1985_vm1, %v1984_v9  ;;  %1803 = vmatpush3.bf16.msra.mxu0 %v1883_v12  ;;  %v1887_v12 = vld [vmem:[%s2362_s2 + $0x98] sm:$0xff]  }
 0xa5c   :  { %1804 = vmatprep.subr.bf16.mxu0 %v1984_v9 }
 0xa5f   :  { %1805 = vmatpush3.bf16.msra.mxu0 %v1884_v15  ;;  %v1890_v15 = vld [vmem:[%s2362_s2 + $0x80] sm:$0xff]  }
 0xa60   :  { %1818 = vmatprep.subr.bf16.mxu0 %v1984_v9 }
 0xb12   :  { %v835_v38 = vpop.f32.mrf.mxu0 }
 0xb13   :  { %v836_v20 = vadd.f32 %v835_v38, %v2080_v56 }
 0xb14   :  { %v1782_v21 = vpop.f32.mrf.mxu0 }
 0xb15   :  { %v842_v22 = vsel %vm143_vm2, %v836_v20, -inf }
 0xb16   :  { %843 = vmax.xlane.f32.xlu1 %v842_v22  ;;  %v838_v23 = vpop.f32.mrf.mxu0 }
 0xb17   :  { %v839_v24 = vadd.f32 %v838_v23, %v2086_v60 }
 0xb18   :  { %v1783_v25 = vpop.f32.mrf.mxu0 }
 0xb19   :  { %v845_v26 = vsel %vm143_vm2, %v839_v24, -inf }
 0xb1a   :  { %846 = vmax.xlane.f32.xlu0 %v845_v26  ;;  %v957_v27 = vpop.f32.mrf.mxu0 }
 0xb1b   :  { %v958_v28 = vadd.f32 %v957_v27, %v2080_v56  ;;  %v1629_v27 = vld [vmem:[%s2363_s3 + $0xb] ss:$0 sm:$0xff] }
 0xb1c   :  { %v1794_v29 = vpop.f32.mrf.mxu0 }
 0xb1d   :  { %v964_v30 = vsel %vm143_vm2, %v958_v28, -inf }
 0xb1e   :  { %965 = vmax.xlane.f32.xlu0 %v964_v30  ;;  %v960_v31 = vpop.f32.mrf.mxu0 }
 0xb1f   :  { %v961_v32 = vadd.f32 %v960_v31, %v2086_v60 }
 0xb20   :  { %v1795_v33 = vpop.f32.mrf.mxu0 }
 0xb21   :  { %v967_v34 = vsel %vm143_vm2, %v961_v32, -inf }
 0xb22   :  { %968 = vmax.xlane.f32.xlu0 %v967_v34 }
 0xb9f   :  { %v844_v35 = vpop.xlane.xlu1 %843 }
 0xba0   :  { %v848_v36 = vsub.f32 %v836_v20, %v844_v35 }
 0xba2   :  { %v850_v39 = vmul.f32 1.442695, %v848_v36 }
 0xba3   :  { %v847_v40 = vpop.xlane.xlu0 %846 }
 0xba4   :  { %1928 = vpow2.f32 %v850_v39  ;;  %v849_v41 = vsub.f32 %v839_v24, %v847_v40 }
 0xba6   :  { %v852_v42 = vmul.f32 1.442695, %v849_v41 }
 0xba7   :  { %v966_v43 = vpop.xlane.xlu0 %965 }
 0xba8   :  { %1930 = vpow2.f32 %v852_v42  ;;  %v970_v56 = vsub.f32 %v958_v28, %v966_v43 }
 0xbaa   :  { %v972_v44 = vmul.f32 1.442695, %v970_v56 }
 0xbab   :  { %v969_v45 = vpop.xlane.xlu0 %968 }
 0xbac   :  { %1932 = vpow2.f32 %v972_v44  ;;  %v971_v46 = vsub.f32 %v961_v32, %v969_v45 }
 0xbae   :  { %v974_v47 = vmul.f32 1.442695, %v971_v46 }
 0xbb0   :  { %1934 = vpow2.f32 %v974_v47 }
 0xbb1   :  { %v1929_v60 = vpop.eup %1928 }
 0xbb2   :  { %v854_v48 = vsel %vm143_vm2, %v1929_v60, 0.0 }
 0xbb3   :  { %855 = vadd.xlane.f32.xlu1 %v854_v48 }
 0xbb5   :  { %v1931_v49 = vpop.eup %1930 }
 0xbb6   :  { %v857_v50 = vsel %vm143_vm2, %v1931_v49, 0.0 }
 0xbb7   :  { %858 = vadd.xlane.f32.xlu0 %v857_v50 }
 0xbb9   :  { %v1933_v51 = vpop.eup %1932 }
 0xbba   :  { %v976_v52 = vsel %vm143_vm2, %v1933_v51, 0.0 }
 0xbbb   :  { %977 = vadd.xlane.f32.xlu1 %v976_v52 }
 0xbbd   :  { %v1935_v53 = vpop.eup %1934 }
 0xbbe   :  { %v979_v54 = vsel %vm143_vm2, %v1935_v53, 0.0 }
 0xbbf   :  { %980 = vadd.xlane.f32.xlu0 %v979_v54 }
 0xbcc   :  { %865 = vrot.lane.b32.xlu1 %v2206_v13, %s1989_s1 }
 0xbd5   :  { %987 = vrot.lane.b32.xlu0 %v2206_v13, %s1990_s9 }
 0xc3c   :  { %v856_v55 = vpop.xlane.xlu1 %855 }
 0xc3d   :  { %1936 = vrcp.f32 %v856_v55 }
 0xc40   :  { %v859_v57 = vpop.xlane.xlu0 %858 }
 0xc41   :  { %1938 = vrcp.f32 %v859_v57 }
 0xc44   :  { %v978_v58 = vpop.xlane.xlu1 %977 }
 0xc45   :  { %1940 = vrcp.f32 %v978_v58 }
 0xc48   :  { %v866_v59 = vpop.permute.xlu1 %865  ;;  %v981_v61 = vpop.xlane.xlu0 %980 }
 0xc49   :  { %1942 = vrcp.f32 %v981_v61  ;;  %1785 = vmatpush3.bf16.msra.mxu1 %v866_v59 }
 0xc4a   :  { %1796 = vmatprep.subr.bf16.mxu1 %v1984_v9  ;;  %v1937_v62 = vpop.eup %1936 }
 0xc4b   :  { %v861_v0 = vmul.f32 %v1937_v62, %v1929_v60  ;;  %v1633_v62 = vld [vmem:[%s2363_s3 + $0xc] ss:$0 sm:$0xff] }
 0xc4c   :  { %v988_v5 = vpop.permute.xlu0 %987 }
 0xc4e   :  { %v1939_v63 = vpop.eup %1938 }
 0xc4f   :  { %v863_v3 = vmul.f32 %v1939_v63, %v1931_v49 }
 0xc51   :  { %v864_v4 = vpack.c.bf16 %v863_v3, %v861_v0 }
 0xc52   :  { %v1941_v6 = vpop.eup %1940 }
 0xc53   :  { %1787 = vmatmul.mubr.msk.bf16.vlgmr.msra.gmra.mxu1 %vm143_vm2, %v864_v4  ;;  %v983_v8 = vmul.f32 %v1941_v6, %v1933_v51  ;;  %v1634_v6 = vld [vmem:[%s2363_s3 + $0xd] ss:$0 sm:$0xff] }
 0xc54   :  { %1797 = vmatpush3.bf16.msra.mxu1 %v988_v5  ;;  %1798 = vmatprep.mubr.msk.bf16.mxu1 %vm1985_vm1, %v1984_v9 }
 0xc55   :  { %1810 = vmatprep.subr.bf16.mxu1 %v1984_v9 }
 0xc56   :  { %v1943_v7 = vpop.eup %1942 }
 0xc57   :  { %v985_v10 = vmul.f32 %v1943_v7, %v1935_v53 }
 0xc59   :  { %v986_v11 = vpack.c.bf16 %v985_v10, %v983_v8 }
 0xc5b   :  { %1799 = vmatmul.mubr.msk.bf16.vlgmr.msra.gmra.mxu1 %vm143_vm2, %v986_v11 }
 0xc5c   :  { %1814 = vmatprep.mubr.msk.bf16.mxu1 %vm1985_vm1, %v1984_v9 }
 0xd13   :  { %v905_v13 = vpop.f32.mrf.mxu1 }
 0xd15   :  { %v1788_v14 = vpop.f32.mrf.mxu1 }
 0xd16   :  { %v1889_v14 = vld [vmem:[%s2362_s2 + $0x88] sm:$0xff]  }
 0xd17   :  { %v908_v16 = vpop.f32.mrf.mxu1 }
 0xd19   :  { %v1789_v17 = vpop.f32.mrf.mxu1 }
 0xd1b   :  { %v1027_v18 = vpop.f32.mrf.mxu1 }
 0xd1d   :  { %v1800_v19 = vpop.f32.mrf.mxu1 }
 0xd1f   :  { %v1030_v37 = vpop.f32.mrf.mxu1 }
 0xd20   :  { %v1866_v38 = vpack.i.bf16 %v1030_v37, %v1027_v18 }
 0xd21   :  { %v1801_v20 = vpop.f32.mrf.mxu1 }
 0xd22   :  { %1867 = vrot.lane.b32.xlu1 %v1866_v38, %s1991_s14 }
 0xd94   :  { %v1868_v21 = vpop.permute.xlu1 %1867 }
 0xd95   :  { %v1870_v22 = vunpack.i.h.bf16 %v1868_v21  ;;  %v1869_v23 = vunpack.i.l.bf16 %v1868_v21 }
 0xd97   :  { %v1043_v24 = vsel %vm143_vm2, %v908_v16, %v1870_v22  ;;  %v1042_v25 = vsel %vm143_vm2, %v905_v13, %v1869_v23  ;;  %v1888_v13 = vld [vmem:[%s2362_s2 + $0x90] sm:$0xff]   ;;  %v1635_v16 = vld [vmem:[%s2363_s3 + $0xe] ss:$0 sm:$0xff] }
 0xd98   :  { %v1048_v26 = vpack.c.bf16 %v1043_v24, %v1042_v25 }
 0xd9a   :  { %1807 = vmatmul.mubr.msk.bf16.vlgmr.msra.gmra.mxu0 %vm25_vm0, %v1048_v26 }
 0xd9b   :  { %1826 = vmatprep.mubr.msk.bf16.mxu0 %vm1985_vm1, %v1984_v9  ;;  %1819 = vmatpush3.bf16.msra.mxu0 %v1887_v12 }
 0xd9c   :  { %1820 = vmatprep.subr.bf16.mxu0 %v1984_v9 }
 0xd9f   :  { %1821 = vmatpush3.bf16.msra.mxu0 %v1888_v13 }
 0xda0   :  { %1822 = vmatprep.subr.bf16.mxu0 %v1984_v9 }
 0xda3   :  { %1823 = vmatpush3.bf16.msra.mxu0 %v1889_v14 }
 0xda4   :  { %1824 = vmatprep.subr.bf16.mxu0 %v1984_v9 }
 0xda7   :  { %1825 = vmatpush3.bf16.msra.mxu0 %v1890_v15 }
 0xda8   :  { %1846 = vmatprep.subr.bf16.mxu0 %v1984_v9 }
 0xe5a   :  { %v1103_v28 = vpop.f32.mrf.mxu0 }
 0xe5b   :  { %v1104_v29 = vadd.f32 %v1629_v27, %v1103_v28 }
 0xe5c   :  { %v1808_v30 = vpop.f32.mrf.mxu0 }
 0xe5d   :  { %v1110_v31 = vadd.f32 %v1104_v29, %v2194_v1  ;;  %v1885_v1 = vld [vmem:[%s2362_s2 + $0x78] sm:$0xff]  }
 0xe5e   :  { %v1106_v32 = vpop.f32.mrf.mxu0  ;;  %1811 = vmatpush3.bf16.msra.mxu1 %v1885_v1 }
 0xe5f   :  { %v1107_v33 = vadd.f32 %v1629_v27, %v1106_v32  ;;  %v1114_v34 = vsel %vm25_vm0, %v1110_v31, 0.0  ;;  %v1122_v41 = vmul.f32 %v1110_v31, %v1110_v31  ;;  %1812 = vmatprep.subr.bf16.mxu1 %v1984_v9 }
 0xe60   :  { %1115 = vadd.xlane.f32.xlu1 %v1114_v34  ;;  %v1809_v35 = vpop.f32.mrf.mxu0 }
 0xe61   :  { %v1111_v36 = vadd.f32 %v1107_v33, %v2196_v2  ;;  %v1124_v43 = vsel %vm25_vm0, %v1122_v41, 0.0  ;;  %v1886_v2 = vld [vmem:[%s2362_s2 + $0x70] sm:$0xff]  }
 0xe62   :  { %1813 = vmatpush3.bf16.msra.mxu1 %v1886_v2 }
 0xe63   :  { %v1117_v39 = vsel %vm25_vm0, %v1111_v36, 0.0  ;;  %v1123_v40 = vmul.f32 %v1111_v36, %v1111_v36  ;;  %1830 = vmatprep.subr.bf16.mxu1 %v1984_v9 }
 0xe64   :  { %1118 = vadd.xlane.f32.xlu0 %v1117_v39 }
 0xe65   :  { %v1127_v42 = vsel %vm25_vm0, %v1123_v40, 0.0 }
 0xe66   :  { %1128 = vadd.xlane.f32.xlu1 %v1127_v42  ;;  %v1639_v42 = vld [vmem:[%s2363_s3 + $0xf] ss:$0 sm:$0xff] }
 0xe68   :  { %1125 = vadd.xlane.f32.xlu0 %v1124_v43 }
 0xee9   :  { %v1116_v56 = vpop.xlane.xlu1 %1115 }
 0xeea   :  { %v1120_v45 = vmul.f32 0.03125, %v1116_v56 }
 0xeec   :  { %v1132_v50 = vmul.f32 %v1120_v45, %v1120_v45  ;;  %v1138_v63 = vsub.f32 %v1110_v31, %v1120_v45 }
 0xeed   :  { %v1119_v44 = vpop.xlane.xlu0 %1118 }
 0xeee   :  { %v1121_v46 = vmul.f32 0.03125, %v1119_v44 }
 0xeef   :  { %v1129_v47 = vpop.xlane.xlu1 %1128 }
 0xef0   :  { %v1133_v60 = vmul.f32 %v1121_v46, %v1121_v46  ;;  %v1131_v48 = vmul.f32 0.03125, %v1129_v47  ;;  %v1139_v59 = vsub.f32 %v1111_v36, %v1121_v46 }
 0xef1   :  { %v1126_v49 = vpop.xlane.xlu0 %1125 }
 0xef2   :  { %v1135_v51 = vsub.f32 %v1131_v48, %v1133_v60  ;;  %v1130_v52 = vmul.f32 0.03125, %v1126_v49 }
 0xef4   :  { %v1137_v53 = vmax.f32 %v1135_v51, 0.0  ;;  %v1134_v54 = vsub.f32 %v1130_v52, %v1132_v50 }
 0xef6   :  { %v1141_v55 = vadd.f32 1e-12, %v1137_v53  ;;  %v1136_v57 = vmax.f32 %v1134_v54, 0.0  ;;  %v1891_v53 = vld [vmem:[%s2362_s2 + $0xa8] sm:$0xff]   ;;  %v1892_v54 = vld [vmem:[%s2362_s2 + $0xa0] sm:$0xff]  }
 0xef8   :  { %1944 = vrsqrt.f32 %v1141_v55  ;;  %v1140_v58 = vadd.f32 1e-12, %v1136_v57 }
 0xefa   :  { %1946 = vrsqrt.f32 %v1140_v58 }
 0xf05   :  { %v1945_v61 = vpop.eup %1944 }
 0xf06   :  { %v1145_v0 = vmul.f32 %v1945_v61, %v1139_v59 }
 0xf07   :  { %v1947_v3 = vpop.eup %1946 }
 0xf08   :  { %v1144_v4 = vmul.f32 %v1947_v3, %v1138_v63  ;;  %v1151_v5 = vmul.f32 %v1633_v62, %v1145_v0 }
 0xf0a   :  { %v1150_v7 = vmul.f32 %v1633_v62, %v1144_v4  ;;  %v1157_v10 = vadd.f32 %v1634_v6, %v1151_v5 }
 0xf0c   :  { %v1156_v8 = vadd.f32 %v1634_v6, %v1150_v7 }
 0xf0e   :  { %v1170_v11 = vpack.c.bf16 %v1157_v10, %v1156_v8 }
 0xf10   :  { %1815 = vmatmul.mubr.msk.bf16.vlgmr.msra.gmra.mxu1 %vm25_vm0, %v1170_v11 }
 0xf11   :  { %1834 = vmatprep.mubr.msk.bf16.mxu1 %vm1985_vm1, %v1984_v9  ;;  %1831 = vmatpush3.bf16.msra.mxu1 %v1891_v53 }
 0xf12   :  { %1832 = vmatprep.subr.bf16.mxu1 %v1984_v9 }
 0xf15   :  { %1833 = vmatpush3.bf16.msra.mxu1 %v1892_v54 }
 0xf16   :  { %1838 = vmatprep.subr.bf16.mxu1 %v1984_v9 }
 0xfd0   :  { %v1225_v17 = vpop.f32.mrf.mxu1 }
 0xfd1   :  { %v1226_v18 = vadd.f32 %v1635_v16, %v1225_v17  ;;  %v1645_v17 = vld [vmem:[%s2363_s3 + $0x10] ss:$0 sm:$0xff] }
 0xfd2   :  { %v1816_v19 = vpop.f32.mrf.mxu1 }
 0xfd3   :  { %v1234_v37 = vmul.f32 0.044715, %v1226_v18  ;;  %v1232_v34 = vmul.f32 0.5, %v1226_v18 }
 0xfd4   :  { %v1228_v38 = vpop.f32.mrf.mxu1 }
 0xfd5   :  { %v1236_v20 = vmul.f32 %v1234_v37, %v1226_v18  ;;  %v1229_v21 = vadd.f32 %v1635_v16, %v1228_v38  ;;  %v1646_v38 = vld [vmem:[%s2363_s3 + $0x11] ss:$0 sm:$0xff] }
 0xfd6   :  { %v1817_v22 = vpop.f32.mrf.mxu1 }
 0xfd7   :  { %v1238_v23 = vmul.f32 %v1236_v20, %v1226_v18  ;;  %v1235_v24 = vmul.f32 0.044715, %v1229_v21  ;;  %v1233_v35 = vmul.f32 0.5, %v1229_v21 }
 0xfd9   :  { %v1240_v25 = vadd.f32 %v1238_v23, %v1226_v18  ;;  %v1237_v26 = vmul.f32 %v1235_v24, %v1229_v21 }
 0xfdb   :  { %v1242_v27 = vmul.f32 0.7978846, %v1240_v25  ;;  %v1239_v28 = vmul.f32 %v1237_v26, %v1229_v21  ;;  %v1893_v25 = vld [vmem:[%s2362_s2 + $0xb8] sm:$0xff]   ;;  %v1894_v26 = vld [vmem:[%s2362_s2 + $0xb0] sm:$0xff]  }
 0xfdd   :  { %1948 = vtanh.f32 %v1242_v27  ;;  %v1241_v29 = vadd.f32 %v1239_v28, %v1229_v21  ;;  %v1647_v27 = vld [vmem:[%s2363_s3 + $0x12] ss:$0 sm:$0xff] }
 0xfdf   :  { %v1243_v30 = vmul.f32 0.7978846, %v1241_v29 }
 0xfe1   :  { %1950 = vtanh.f32 %v1243_v30 }
 0xfea   :  { %v1949_v31 = vpop.eup %1948 }
 0xfeb   :  { %v1246_v32 = vadd.f32 1.0, %v1949_v31 }
 0xfed   :  { %v1248_v39 = vmul.f32 %v1246_v32, %v1232_v34 }
 0xfee   :  { %v1951_v33 = vpop.eup %1950 }
 0xfef   :  { %v1247_v36 = vadd.f32 1.0, %v1951_v33 }
 0xff1   :  { %v1249_v40 = vmul.f32 %v1247_v36, %v1233_v35  ;;  %v1651_v35 = vld [vmem:[%s2363_s3 + $0x13] ss:$0 sm:$0xff] }
 0xff3   :  { %v1250_v41 = vpack.c.bf16 %v1249_v40, %v1248_v39 }
 0xff5   :  { %1827 = vmatmul.mubr.msk.bf16.vlgmr.msra.gmra.mxu0 %vm629_vm3, %v1250_v41 }
 0xff6   :  { %1848 = vmatprep.mubr.msk.bf16.mxu0 %vm1985_vm1, %v1984_v9 }
0x10b5   :  { %v1317_v43 = vpop.f32.mrf.mxu0 }
0x10b6   :  { %v1318_v1 = vadd.f32 %v1639_v42, %v1317_v43 }
0x10b7   :  { %v1828_v2 = vpop.f32.mrf.mxu0 }
0x10b8   :  { %v1324_v56 = vadd.f32 %v1318_v1, %v1156_v8  ;;  %v1655_v2 = vld [vmem:[%s2363_s3 + $0x14] ss:$0 sm:$0xff] }
0x10b9   :  { %v1320_v44 = vpop.f32.mrf.mxu0 }
0x10ba   :  { %v1321_v45 = vadd.f32 %v1639_v42, %v1320_v44  ;;  %v1328_v46 = vsel %vm25_vm0, %v1324_v56, 0.0  ;;  %v1336_v47 = vmul.f32 %v1324_v56, %v1324_v56 }
0x10bb   :  { %1329 = vadd.xlane.f32.xlu1 %v1328_v46  ;;  %v1829_v60 = vpop.f32.mrf.mxu0 }
0x10bc   :  { %v1325_v48 = vadd.f32 %v1321_v45, %v1157_v10  ;;  %v1338_v49 = vsel %vm25_vm0, %v1336_v47, 0.0 }
0x10be   :  { %v1331_v50 = vsel %vm25_vm0, %v1325_v48, 0.0  ;;  %v1337_v51 = vmul.f32 %v1325_v48, %v1325_v48 }
0x10bf   :  { %1339 = vadd.xlane.f32.xlu1 %v1338_v49  ;;  %1332 = vadd.xlane.f32.xlu0 %v1331_v50 }
0x10c0   :  { %v1341_v52 = vsel %vm25_vm0, %v1337_v51, 0.0 }
0x10c3   :  { %1342 = vadd.xlane.f32.xlu0 %v1341_v52 }
0x1144   :  { %v1330_v55 = vpop.xlane.xlu1 %1329 }
0x1145   :  { %v1334_v57 = vmul.f32 0.03125, %v1330_v55 }
0x1147   :  { %v1346_v61 = vmul.f32 %v1334_v57, %v1334_v57  ;;  %v1352_v13 = vsub.f32 %v1324_v56, %v1334_v57 }
0x1148   :  { %v1340_v58 = vpop.xlane.xlu1 %1339  ;;  %v1333_v59 = vpop.xlane.xlu0 %1332 }
0x1149   :  { %v1344_v62 = vmul.f32 0.03125, %v1340_v58  ;;  %v1335_v63 = vmul.f32 0.03125, %v1333_v59 }
0x114b   :  { %v1348_v0 = vsub.f32 %v1344_v62, %v1346_v61  ;;  %v1347_v5 = vmul.f32 %v1335_v63, %v1335_v63  ;;  %v1353_v15 = vsub.f32 %v1325_v48, %v1335_v63 }
0x114c   :  { %v1343_v3 = vpop.xlane.xlu0 %1342 }
0x114d   :  { %v1350_v4 = vmax.f32 %v1348_v0, 0.0  ;;  %v1345_v6 = vmul.f32 0.03125, %v1343_v3 }
0x114f   :  { %v1354_v7 = vadd.f32 1e-12, %v1350_v4  ;;  %v1349_v8 = vsub.f32 %v1345_v6, %v1347_v5 }
0x1151   :  { %1952 = vrsqrt.f32 %v1354_v7  ;;  %v1351_v10 = vmax.f32 %v1349_v8, 0.0 }
0x1153   :  { %v1355_v11 = vadd.f32 1e-12, %v1351_v10 }
0x1155   :  { %1954 = vrsqrt.f32 %v1355_v11 }
0x115e   :  { %v1953_v12 = vpop.eup %1952 }
0x115f   :  { %v1358_v14 = vmul.f32 %v1953_v12, %v1352_v13 }
0x1161   :  { %v1364_v19 = vmul.f32 %v1645_v17, %v1358_v14 }
0x1162   :  { %v1955_v16 = vpop.eup %1954 }
0x1163   :  { %v1359_v18 = vmul.f32 %v1955_v16, %v1353_v15  ;;  %v1370_v21 = vadd.f32 %v1646_v38, %v1364_v19 }
0x1165   :  { %v1365_v37 = vmul.f32 %v1645_v17, %v1359_v18 }
0x1167   :  { %v1371_v20 = vadd.f32 %v1646_v38, %v1365_v37 }
0x1169   :  { %v1373_v22 = vrot.slane %v1371_v20, 7 }
0x116b   :  { %v1376_v23 = vsel %vm1375_vm4, %v1370_v21, %v1373_v22 }
0x116c   :  { %v1381_v24 = vpack.c.bf16 %v1376_v23, %v1376_v23 }
0x116e   :  { %1835 = vmatmul.mubr.msk.bf16.vlgmr.msra.gmra.mxu1 %vm25_vm0, %v1381_v24 }
0x116f   :  { %1842 = vmatprep.mubr.msk.bf16.mxu1 %vm1985_vm1, %v1984_v9  ;;  %1839 = vmatpush3.bf16.msra.mxu1 %v1893_v25 }
0x1170   :  { %1840 = vmatprep.subr.bf16.mxu1 %v1984_v9  ;;  %v1895_v9 = vld [vmem:[%s2362_s2 + $0xc0] sm:$0xff]   ;;  %s1992_s2 = smov [#allocation2]  }
0x1171   :  { %1847 = vmatpush3.bf16.msra.mxu0 %v1895_v9  ;;  %s1585_s3 = sshll.u32 %s1992_s2, 4  ;;  %s1586_s3 = int_to_ptr.vmem [resolvable:$true] %s1585_s3 }
0x1172   :  { %s1962_s15 = scalar_lea.vmem %s1586_s3, 32  ;;  %p1967_p1 = scmp.lt.s32.totalorder %s1586_s3, %s1586_s3 }
0x1173   :  { %1841 = vmatpush3.bf16.msra.mxu1 %v1894_v26  ;;  %p1963_p0 = scmp.ne.s32.totalorder %s1586_s3, %s1962_s15  ;;  %p1968_p2 = scmp.lt.s32.totalorder %s1962_s15, %s1962_s15 }
0x1175   :  { %p1969_p3 = por %p1968_p2, %p1967_p1 }
0x1177   :  { %p1970_p4 = pnand %p1969_p3, %p1963_p0 }
0x122e   :  { %v1436_v28 = vpop.f32.mrf.mxu1 }
0x122f   :  { %v1437_v29 = vadd.f32 %v1647_v27, %v1436_v28 }
0x1230   :  { %v1836_v30 = vpop.f32.mrf.mxu1 }
0x1231   :  { %1956 = vtanh.f32 %v1437_v29 }
0x1232   :  { %v1439_v31 = vpop.f32.mrf.mxu1 }
0x1234   :  { %v1837_v32 = vpop.f32.mrf.mxu1 }
0x123e   :  { %v1957_v33 = vpop.eup %1956 }
0x123f   :  { %v1447_v34 = vpack.c.bf16 %v1957_v33, %v1957_v33 }
0x1241   :  { %1843 = vmatmul.mubr.msk.bf16.vlgmr.msra.gmra.mxu1 %vm25_vm0, %v1447_v34 }
0x1301   :  { %v1502_v36 = vpop.f32.mrf.mxu1 }
0x1302   :  { %v1503_v39 = vadd.f32 %v1651_v35, %v1502_v36 }
0x1303   :  { %v1844_v40 = vpop.f32.mrf.mxu1 }
0x1304   :  { %v1508_v41 = vmax.f32 %v1503_v39, 0.0 }
0x1305   :  { %v1505_v42 = vpop.f32.mrf.mxu1 }
0x1306   :  { %v1511_v43 = vpack.c.bf16 %v1508_v41, %v1508_v41 }
0x1307   :  { %v1845_v1 = vpop.f32.mrf.mxu1 }
0x1308   :  { %1849 = vmatmul.mubr.msk.bf16.vlgmr.msra.gmra.mxu0 %vm143_vm2, %v1511_v43 }
0x13c8   :  { %v1560_v56 = vpop.f32.mrf.mxu0 }
0x13c9   :  { %v1561_v44 = vadd.f32 %v1655_v2, %v1560_v56 }
0x13ca   :  { %v1850_v45 = vpop.f32.mrf.mxu0 }
0x13cb   :  { %v1567_v46 = vsel %vm1566_vm5, %v1561_v44, -inf }
0x13cc   :  { %1568 = vmax.xlane.f32.xlu0 %v1567_v46  ;;  %v1563_v47 = vpop.f32.mrf.mxu0 }
0x13ce   :  { %v1851_v60 = vpop.f32.mrf.mxu0 }
0x1455   :  { %v1569_v48 = vpop.xlane.xlu0 %1568 }
0x1456   :  { %v1570_v49 = vsub.f32 %v1561_v44, %v1569_v48 }
0x1458   :  { %v1571_v50 = vmul.f32 1.442695, %v1570_v49 }
0x145a   :  { %1958 = vpow2.f32 %v1571_v50 }
0x1467   :  { %v1959_v51 = vpop.eup %1958 }
0x1468   :  { %v1573_v52 = vsel %vm1566_vm5, %v1959_v51, 0.0 }
0x1469   :  { %1574 = vadd.xlane.f32.xlu1 %v1573_v52 }
0x14f2   :  { %v1575_v53 = vpop.xlane.xlu1 %1574 }
0x14f3   :  { %1960 = vrcp.f32 %v1575_v53 }
0x1500   :  { %v1961_v54 = vpop.eup %1960 }
0x1501   :  { %v1577_v55 = vmul.f32 %v1961_v54, %v1959_v51 }
0x1503   :  { %1578 = vst.msk [vmem:[#allocation2] sm:$0x3] %vm1566_vm5, %v1577_v55 }
0x1504   :  { %1973 = shalt.err (!%p1970_p4)
}
0x1505   :  { %1588 = dma.vmem_to_hbm [thread:$0]  %s1586_s3, 32, %s2364_s4, [#allocation3]  }
0x1506   :  { %1982 = dma.done.wait [#allocation3], 32  }
0x1507   :  { %1983 = vsyncadd [#allocation3], 4294967264 }
0x1508   :  { %1592 = vsyncpa [#allocation3], 1 }

</bundles_post_ra>
